<compile_context>
chip_gen: v6e
topology: v6e:2x2x1
jax: 0.10.0
libtpu: 0.0.40
codegen_flags: <defaults>
</compile_context>

<pallas_src>
import functools

import jax
import jax.numpy as jnp
from jax.experimental import pallas as pl
from jax.experimental.pallas import tpu as pltpu

NEG_SLOPE = 0.01  # F.leaky_relu default negative slope


# ----------------------------------------------------------------------------
# In-kernel helpers (traced inline into the fused kernel)
# ----------------------------------------------------------------------------
def _leaky_relu(x):
    return jnp.where(x > 0, x, NEG_SLOPE * x)


def _softmax_rows(x, approx=True):
    x = x - jnp.max(x, axis=1, keepdims=True)
    p = jnp.exp(x)
    s = jnp.sum(p, axis=1, keepdims=True)
    if approx:
        return p * pl.reciprocal(s, approx=True)   # divide on the EUP slot
    return p / s


def _elu(x):
    # clamp the exp argument so the unselected branch never overflows
    return jnp.where(x > 0, x, jnp.exp(jnp.minimum(x, 0.0)) - 1.0)


def _gat_aggregate(src_z, dst_z, a_src, a_dst, bias):
    # Dense GAT aggregation over a complete bipartite edge set:
    #   e[d, s] = leaky_relu( a_src . src_z[s] + a_dst . dst_z[d] + b )
    #   alpha   = softmax_s(e) ;  h[d] = sum_s alpha[d, s] * src_z[s]
    # Scores use VPU multiply + lane-reduce (no 1-column MXU matmuls).
    s_src = jnp.sum(src_z * a_src, axis=1, keepdims=True)              # [Ns, 1]
    s_dst = jnp.sum(dst_z * a_dst, axis=1, keepdims=True) + bias       # [Nd, 1]
    e = _leaky_relu(s_dst + jnp.transpose(s_src))                      # [Nd, Ns]
    alpha = _softmax_rows(e, approx=True)
    return jnp.dot(alpha, src_z, preferred_element_type=jnp.float32)   # [Nd, D]


# ----------------------------------------------------------------------------
# Fused GATON forward kernel (one pallas_call for the whole model)
# ----------------------------------------------------------------------------
def _gaton_kernel(num_heads,
                  doc_in_ref, word_in_ref,
                  doc_wt_ref, doc_b_ref, word_wt_ref, word_b_ref,
                  l1_asrc_d2w_ref, l1_adst_d2w_ref,
                  l1_asrc_w2d_ref, l1_adst_w2d_ref,
                  l1_ab_ref, l1_fcwt_ref, l1_fcb_ref,
                  l2_asrc_d2w_ref, l2_adst_d2w_ref,
                  l2_asrc_w2d_ref, l2_adst_w2d_ref,
                  l2_ab_ref, l2_fcwt_ref, l2_fcb_ref,
                  doc_out_ref, word_out_ref):
    f32 = jnp.float32

    # ---- input projections: x @ W^T + b (W^T pre-computed host-side) ----
    doc_z = jnp.dot(doc_in_ref[...], doc_wt_ref[...],
                    preferred_element_type=f32) + doc_b_ref[...]        # [Nd, D]
    word_z = jnp.dot(word_in_ref[...], word_wt_ref[...],
                     preferred_element_type=f32) + word_b_ref[...]      # [Nw, D]

    # ---- GAT layer 1: num_heads heads, mean-merged ----
    hid = l1_fcwt_ref.shape[2]
    doc_acc = jnp.zeros((doc_z.shape[0], hid), f32)
    word_acc = jnp.zeros((word_z.shape[0], hid), f32)
    for h in range(num_heads):  # static unroll over tiny head count
        # etype 'include'  (doc -> word): word nodes aggregate doc features
        word_h = _gat_aggregate(doc_z, word_z,
                                l1_asrc_d2w_ref[h:h + 1, :],
                                l1_adst_d2w_ref[h:h + 1, :],
                                l1_ab_ref[h, 0])
        # etype 'included' (word -> doc): doc nodes aggregate word features
        doc_h = _gat_aggregate(word_z, doc_z,
                               l1_asrc_w2d_ref[h:h + 1, :],
                               l1_adst_w2d_ref[h:h + 1, :],
                               l1_ab_ref[h, 1])
        fc_wt = l1_fcwt_ref[h, :, :]                                    # [D, H]
        fc_b = l1_fcb_ref[h:h + 1, :]                                   # [1, H]
        doc_acc = doc_acc + _softmax_rows(
            jnp.dot(doc_h, fc_wt, preferred_element_type=f32) + fc_b)
        word_acc = word_acc + _softmax_rows(
            jnp.dot(word_h, fc_wt, preferred_element_type=f32) + fc_b)

    inv_nh = 1.0 / num_heads
    doc_z2 = _elu(doc_acc * inv_nh)
    word_z2 = _elu(word_acc * inv_nh)

    # ---- GAT layer 2: single head ----
    word_h2 = _gat_aggregate(doc_z2, word_z2,
                             l2_asrc_d2w_ref[...], l2_adst_d2w_ref[...],
                             l2_ab_ref[0, 0])
    doc_h2 = _gat_aggregate(word_z2, doc_z2,
                            l2_asrc_w2d_ref[...], l2_adst_w2d_ref[...],
                            l2_ab_ref[0, 1])

    fc2_wt = l2_fcwt_ref[...]                                           # [H, T]
    fc2_b = l2_fcb_ref[...]                                             # [1, T]
    # final softmaxes use exact division so output rows sum to 1 to fp accuracy
    doc_out_ref[...] = _softmax_rows(
        jnp.dot(doc_h2, fc2_wt, preferred_element_type=f32) + fc2_b, approx=False)
    word_out_ref[...] = _softmax_rows(
        jnp.dot(word_h2, fc2_wt, preferred_element_type=f32) + fc2_b, approx=False)


def gaton_forward(packed, doc_input, word_input):
    num_heads = packed["l1_fcwt"].shape[0]
    topic_num = packed["l2_fcwt"].shape[1]
    n_doc = doc_input.shape[0]
    n_word = word_input.shape[0]

    vmem = pl.BlockSpec(memory_space=pltpu.MemorySpace.VMEM)
    smem = pl.BlockSpec(memory_space=pltpu.MemorySpace.SMEM)
    in_specs = [vmem, vmem,                 # doc_in, word_in
                vmem, vmem, vmem, vmem,     # doc_wt, doc_b, word_wt, word_b
                vmem, vmem, vmem, vmem,     # layer-1 attention vectors
                smem,                       # layer-1 attention biases (scalars)
                vmem, vmem,                 # layer-1 fc W^T / b
                vmem, vmem, vmem, vmem,     # layer-2 attention vectors
                smem,                       # layer-2 attention biases (scalars)
                vmem, vmem]                 # layer-2 fc W^T / b

    return pl.pallas_call(
        functools.partial(_gaton_kernel, num_heads),
        out_shape=(jax.ShapeDtypeStruct((n_doc, topic_num), jnp.float32),
                   jax.ShapeDtypeStruct((n_word, topic_num), jnp.float32)),
        in_specs=in_specs,
        out_specs=(vmem, vmem),
    )(doc_input, word_input,
      packed["doc_wt"], packed["doc_b"], packed["word_wt"], packed["word_b"],
      packed["l1_asrc_d2w"], packed["l1_adst_d2w"],
      packed["l1_asrc_w2d"], packed["l1_adst_w2d"],
      packed["l1_ab"], packed["l1_fcwt"], packed["l1_fcb"],
      packed["l2_asrc_d2w"], packed["l2_adst_d2w"],
      packed["l2_asrc_w2d"], packed["l2_adst_w2d"],
      packed["l2_ab"], packed["l2_fcwt"], packed["l2_fcb"])


# ----------------------------------------------------------------------------
# Deterministic parameter init (PyTorch-Linear-style uniform bounds)
# ----------------------------------------------------------------------------
def init_linear(key, out_dim, in_dim):
    k1, k2 = jax.random.split(key)
    bound = 1.0 / jnp.sqrt(float(in_dim))
    w = jax.random.uniform(k1, (out_dim, in_dim), jnp.float32, -bound, bound)
    b = jax.random.uniform(k2, (out_dim,), jnp.float32, -bound, bound)
    return w, b


def init_gat_layer(key, in_dim, out_dim):
    k1, k2, k3 = jax.random.split(key, 3)
    return {"attn_d2w": init_linear(k1, 1, 2 * in_dim),
            "attn_w2d": init_linear(k2, 1, 2 * in_dim),
            "fc": init_linear(k3, out_dim, in_dim)}


def init_gaton(key, topic_num, vocabulary_size, init_word_emb_size,
               graph_input_dim, graph_hidden_dim, num_heads):
    keys = jax.random.split(key, 4)
    return {
        "word_linear": init_linear(keys[0], graph_input_dim, init_word_emb_size),
        "doc_linear": init_linear(keys[1], graph_input_dim, vocabulary_size),
        "gat_layer1": [init_gat_layer(k, graph_input_dim, graph_hidden_dim)
                       for k in jax.random.split(keys[2], num_heads)],
        "gat_layer2": [init_gat_layer(keys[3], graph_hidden_dim, topic_num)],
    }


# ----------------------------------------------------------------------------
# Pack raw (PyTorch-layout) params into kernel layout ONCE:
#  - Linear weights pre-transposed (W^T), biases reshaped to [1, out]
#  - per-head attention vectors / fc weights stacked along a leading head axis
#  - scalar attention biases gathered into small SMEM-bound arrays [nh, 2]
# ----------------------------------------------------------------------------
def _pack_heads(head_params, in_dim):
    asrc_d2w = jnp.stack([p["attn_d2w"][0][0, :in_dim] for p in head_params])
    adst_d2w = jnp.stack([p["attn_d2w"][0][0, in_dim:] for p in head_params])
    asrc_w2d = jnp.stack([p["attn_w2d"][0][0, :in_dim] for p in head_params])
    adst_w2d = jnp.stack([p["attn_w2d"][0][0, in_dim:] for p in head_params])
    ab = jnp.stack([jnp.concatenate([p["attn_d2w"][1], p["attn_w2d"][1]])
                    for p in head_params])                       # [nh, 2]
    fc_wt = jnp.stack([p["fc"][0].T for p in head_params])       # [nh, in, out]
    fc_b = jnp.stack([p["fc"][1] for p in head_params])          # [nh, out]
    return asrc_d2w, adst_d2w, asrc_w2d, adst_w2d, ab, fc_wt, fc_b


def pack_gaton_params(raw, graph_input_dim, graph_hidden_dim):
    word_w, word_b = raw["word_linear"]
    doc_w, doc_b = raw["doc_linear"]
    l1 = _pack_heads(raw["gat_layer1"], graph_input_dim)
    l2 = _pack_heads(raw["gat_layer2"], graph_hidden_dim)
    return {
        "doc_wt": doc_w.T, "doc_b": doc_b.reshape(1, -1),
        "word_wt": word_w.T, "word_b": word_b.reshape(1, -1),
        "l1_asrc_d2w": l1[0], "l1_adst_d2w": l1[1],
        "l1_asrc_w2d": l1[2], "l1_adst_w2d": l1[3],
        "l1_ab": l1[4], "l1_fcwt": l1[5], "l1_fcb": l1[6],
        "l2_asrc_d2w": l2[0], "l2_adst_d2w": l2[1],
        "l2_asrc_w2d": l2[2], "l2_adst_w2d": l2[3],
        "l2_ab": l2[4], "l2_fcwt": l2[5][0], "l2_fcb": l2[6],
    }


# ----------------------------------------------------------------------------
# Pure-JAX reference (same math, exact softmax) for a sanity check
# ----------------------------------------------------------------------------
def _ref_aggregate(src_z, dst_z, w, b):
    d = src_z.shape[1]
    a_src = w[0, :d]
    a_dst = w[0, d:]
    e = dst_z @ a_dst[:, None] + (src_z @ a_src[:, None]).T + b
    alpha = jax.nn.softmax(jax.nn.leaky_relu(e, NEG_SLOPE), axis=1)
    return alpha @ src_z


def _ref_gat_layer(p, doc_z, word_z):
    w_d2w, b_d2w = p["attn_d2w"]
    w_w2d, b_w2d = p["attn_w2d"]
    fc_w, fc_b = p["fc"]
    word_h = _ref_aggregate(doc_z, word_z, w_d2w, b_d2w)
    doc_h = _ref_aggregate(word_z, doc_z, w_w2d, b_w2d)
    return (jax.nn.softmax(doc_h @ fc_w.T + fc_b, axis=1),
            jax.nn.softmax(word_h @ fc_w.T + fc_b, axis=1))


def _ref_forward(raw, doc_input, word_input):
    doc_z = doc_input @ raw["doc_linear"][0].T + raw["doc_linear"][1]
    word_z = word_input @ raw["word_linear"][0].T + raw["word_linear"][1]
    outs = [_ref_gat_layer(p, doc_z, word_z) for p in raw["gat_layer1"]]
    doc_z = jax.nn.elu(jnp.mean(jnp.stack([o[0] for o in outs], 1), 1))
    word_z = jax.nn.elu(jnp.mean(jnp.stack([o[1] for o in outs], 1), 1))
    return _ref_gat_layer(raw["gat_layer2"][0], doc_z, word_z)


# ----------------------------------------------------------------------------
# Main
# ----------------------------------------------------------------------------
if __name__ == "__main__":
    topic_num = 8
    vocabulary_size = 32
    init_word_emb_size = 16
    graph_input_dim = 32
    graph_hidden_dim = 32
    nums_head = 2
    n_doc, n_word = 8, 16

    key = jax.random.PRNGKey(0)
    k_params, k_doc, k_word = jax.random.split(key, 3)

    raw_params = init_gaton(k_params, topic_num, vocabulary_size,
                            init_word_emb_size, graph_input_dim,
                            graph_hidden_dim, nums_head)
    packed = pack_gaton_params(raw_params, graph_input_dim, graph_hidden_dim)

    doc_input = jax.random.normal(k_doc, (n_doc, vocabulary_size), jnp.float32)
    word_input = jax.random.normal(k_word, (n_word, init_word_emb_size),
                                   jnp.float32)

    fwd = jax.jit(gaton_forward)
    doc_topic_dist, word_topic_dist = fwd(packed, doc_input, word_input)
    jax.block_until_ready((doc_topic_dist, word_topic_dist))

    assert doc_topic_dist.shape == (n_doc, topic_num)
    assert word_topic_dist.shape == (n_word, topic_num)
    # rows are softmax distributions -> should sum to 1
    assert jnp.allclose(jnp.sum(doc_topic_dist, axis=1), 1.0, atol=1e-4)
    assert jnp.allclose(jnp.sum(word_topic_dist, axis=1), 1.0, atol=1e-4)

    # sanity check against a pure-JAX reference of the same math
    ref_doc, ref_word = _ref_forward(raw_params, doc_input, word_input)
    assert jnp.allclose(doc_topic_dist, ref_doc, atol=1e-2)
    assert jnp.allclose(word_topic_dist, ref_word, atol=1e-2)

    print("KERNEL_OK")
</pallas_src>

<mosaic_0001>
module attributes {stable_mosaic.version = 11 : i64} {
  func.func @_gaton_kernel(%arg0: memref<8x32xf32, #tpu.memory_space<vmem>>, %arg1: memref<16x16xf32, #tpu.memory_space<vmem>>, %arg2: memref<32x32xf32, #tpu.memory_space<vmem>>, %arg3: memref<1x32xf32, #tpu.memory_space<vmem>>, %arg4: memref<16x32xf32, #tpu.memory_space<vmem>>, %arg5: memref<1x32xf32, #tpu.memory_space<vmem>>, %arg6: memref<2x32xf32, #tpu.memory_space<vmem>>, %arg7: memref<2x32xf32, #tpu.memory_space<vmem>>, %arg8: memref<2x32xf32, #tpu.memory_space<vmem>>, %arg9: memref<2x32xf32, #tpu.memory_space<vmem>>, %arg10: memref<2x2xf32, #tpu.memory_space<smem>>, %arg11: memref<2x32x32xf32, #tpu.memory_space<vmem>>, %arg12: memref<2x32xf32, #tpu.memory_space<vmem>>, %arg13: memref<1x32xf32, #tpu.memory_space<vmem>>, %arg14: memref<1x32xf32, #tpu.memory_space<vmem>>, %arg15: memref<1x32xf32, #tpu.memory_space<vmem>>, %arg16: memref<1x32xf32, #tpu.memory_space<vmem>>, %arg17: memref<1x2xf32, #tpu.memory_space<smem>>, %arg18: memref<32x8xf32, #tpu.memory_space<vmem>>, %arg19: memref<1x8xf32, #tpu.memory_space<vmem>>, %arg20: memref<8x8xf32, #tpu.memory_space<vmem>>, %arg21: memref<16x8xf32, #tpu.memory_space<vmem>>) attributes {dimension_semantics = [], scalar_prefetch = 0 : i64, scratch_operands = 0 : i64, tpu.core_type = #tpu.core_type<tc>} {
    %c0 = arith.constant 0 : index
    %c0_0 = arith.constant 0 : index
    %0 = vector.load %arg0[%c0, %c0_0] : memref<8x32xf32, #tpu.memory_space<vmem>>, vector<8x32xf32>
    %c0_1 = arith.constant 0 : index
    %c0_2 = arith.constant 0 : index
    %1 = vector.load %arg2[%c0_1, %c0_2] : memref<32x32xf32, #tpu.memory_space<vmem>>, vector<32x32xf32>
    %cst = arith.constant dense<0.000000e+00> : vector<8x32xf32>
    %2 = tpu.matmul %0, %1, %cst {dimension_numbers = #tpu.dot_dimension_numbers<[1], [0], [0], [1], [0, 0, 1, 1], [], []>} : vector<8x32xf32>, vector<32x32xf32>, vector<8x32xf32> -> vector<8x32xf32>
    %c0_3 = arith.constant 0 : index
    %c0_4 = arith.constant 0 : index
    %3 = vector.load %arg3[%c0_3, %c0_4] : memref<1x32xf32, #tpu.memory_space<vmem>>, vector<1x32xf32>
    %4 = vector.broadcast %3 : vector<1x32xf32> to vector<8x32xf32>
    %5 = arith.addf %2, %4 : vector<8x32xf32>
    %c0_5 = arith.constant 0 : index
    %c0_6 = arith.constant 0 : index
    %6 = vector.load %arg1[%c0_5, %c0_6] : memref<16x16xf32, #tpu.memory_space<vmem>>, vector<16x16xf32>
    %c0_7 = arith.constant 0 : index
    %c0_8 = arith.constant 0 : index
    %7 = vector.load %arg4[%c0_7, %c0_8] : memref<16x32xf32, #tpu.memory_space<vmem>>, vector<16x32xf32>
    %cst_9 = arith.constant dense<0.000000e+00> : vector<16x32xf32>
    %8 = tpu.matmul %6, %7, %cst_9 {dimension_numbers = #tpu.dot_dimension_numbers<[1], [0], [0], [1], [0, 0, 1, 1], [], []>} : vector<16x16xf32>, vector<16x32xf32>, vector<16x32xf32> -> vector<16x32xf32>
    %c0_10 = arith.constant 0 : index
    %c0_11 = arith.constant 0 : index
    %9 = vector.load %arg5[%c0_10, %c0_11] : memref<1x32xf32, #tpu.memory_space<vmem>>, vector<1x32xf32>
    %10 = vector.broadcast %9 : vector<1x32xf32> to vector<16x32xf32>
    %11 = arith.addf %8, %10 : vector<16x32xf32>
    %cst_12 = arith.constant 0.000000e+00 : f32
    %12 = vector.broadcast %cst_12 : f32 to vector<8x32xf32>
    %cst_13 = arith.constant 0.000000e+00 : f32
    %13 = vector.broadcast %cst_13 : f32 to vector<16x32xf32>
    %c0_14 = arith.constant 0 : index
    %c0_15 = arith.constant 0 : index
    %14 = vector.load %arg6[%c0_14, %c0_15] : memref<2x32xf32, #tpu.memory_space<vmem>>, vector<1x32xf32>
    %c0_16 = arith.constant 0 : index
    %c0_17 = arith.constant 0 : index
    %15 = vector.load %arg7[%c0_16, %c0_17] : memref<2x32xf32, #tpu.memory_space<vmem>>, vector<1x32xf32>
    %c0_18 = arith.constant 0 : index
    %c0_19 = arith.constant 0 : index
    %16 = memref.load %arg10[%c0_18, %c0_19] : memref<2x2xf32, #tpu.memory_space<smem>>
    %17 = vector.broadcast %14 : vector<1x32xf32> to vector<8x32xf32>
    %18 = arith.mulf %5, %17 : vector<8x32xf32>
    %cst_20 = arith.constant dense<0.000000e+00> : vector<8xf32>
    %19 = vector.multi_reduction <add>, %18, %cst_20 [1] : vector<8x32xf32> to vector<8xf32>
    %20 = vector.shape_cast %19 : vector<8xf32> to vector<8x1xf32>
    %21 = vector.broadcast %15 : vector<1x32xf32> to vector<16x32xf32>
    %22 = arith.mulf %11, %21 : vector<16x32xf32>
    %cst_21 = arith.constant dense<0.000000e+00> : vector<16xf32>
    %23 = vector.multi_reduction <add>, %22, %cst_21 [1] : vector<16x32xf32> to vector<16xf32>
    %24 = vector.shape_cast %23 : vector<16xf32> to vector<16x1xf32>
    %25 = vector.broadcast %16 : f32 to vector<16x1xf32>
    %26 = arith.addf %24, %25 : vector<16x1xf32>
    %27 = tpu.transpose %20, [1, 0] : vector<8x1xf32> -> vector<1x8xf32>
    %28 = vector.broadcast %26 : vector<16x1xf32> to vector<16x8xf32>
    %29 = vector.broadcast %27 : vector<1x8xf32> to vector<16x8xf32>
    %30 = arith.addf %28, %29 : vector<16x8xf32>
    %cst_22 = arith.constant 0.000000e+00 : f32
    %31 = vector.broadcast %cst_22 : f32 to vector<16x8xf32>
    %32 = arith.cmpf ogt, %30, %31 : vector<16x8xf32>
    %cst_23 = arith.constant 0.00999999977 : f32
    %33 = vector.broadcast %cst_23 : f32 to vector<16x8xf32>
    %34 = arith.mulf %33, %30 : vector<16x8xf32>
    %35 = arith.select %32, %30, %34 : vector<16x8xi1>, vector<16x8xf32>
    %cst_24 = arith.constant dense<0xFF800000> : vector<16xf32>
    %36 = vector.multi_reduction <maximumf>, %35, %cst_24 [1] : vector<16x8xf32> to vector<16xf32>
    %37 = vector.shape_cast %36 : vector<16xf32> to vector<16x1xf32>
    %38 = vector.broadcast %37 : vector<16x1xf32> to vector<16x8xf32>
    %39 = arith.subf %35, %38 : vector<16x8xf32>
    %40 = math.exp %39 : vector<16x8xf32>
    %cst_25 = arith.constant dense<0.000000e+00> : vector<16xf32>
    %41 = vector.multi_reduction <add>, %40, %cst_25 [1] : vector<16x8xf32> to vector<16xf32>
    %42 = vector.shape_cast %41 : vector<16xf32> to vector<16x1xf32>
    %43 = tpu.reciprocal %42 {approx = true} : vector<16x1xf32> -> vector<16x1xf32>
    %44 = vector.broadcast %43 : vector<16x1xf32> to vector<16x8xf32>
    %45 = arith.mulf %40, %44 : vector<16x8xf32>
    %cst_26 = arith.constant dense<0.000000e+00> : vector<16x32xf32>
    %46 = tpu.matmul %45, %5, %cst_26 {dimension_numbers = #tpu.dot_dimension_numbers<[1], [0], [0], [1], [0, 0, 1, 1], [], []>} : vector<16x8xf32>, vector<8x32xf32>, vector<16x32xf32> -> vector<16x32xf32>
    %c0_27 = arith.constant 0 : index
    %c0_28 = arith.constant 0 : index
    %47 = vector.load %arg8[%c0_27, %c0_28] : memref<2x32xf32, #tpu.memory_space<vmem>>, vector<1x32xf32>
    %c0_29 = arith.constant 0 : index
    %c0_30 = arith.constant 0 : index
    %48 = vector.load %arg9[%c0_29, %c0_30] : memref<2x32xf32, #tpu.memory_space<vmem>>, vector<1x32xf32>
    %c0_31 = arith.constant 0 : index
    %c1 = arith.constant 1 : index
    %49 = memref.load %arg10[%c0_31, %c1] : memref<2x2xf32, #tpu.memory_space<smem>>
    %50 = vector.broadcast %47 : vector<1x32xf32> to vector<16x32xf32>
    %51 = arith.mulf %11, %50 : vector<16x32xf32>
    %cst_32 = arith.constant dense<0.000000e+00> : vector<16xf32>
    %52 = vector.multi_reduction <add>, %51, %cst_32 [1] : vector<16x32xf32> to vector<16xf32>
    %53 = vector.shape_cast %52 : vector<16xf32> to vector<16x1xf32>
    %54 = vector.broadcast %48 : vector<1x32xf32> to vector<8x32xf32>
    %55 = arith.mulf %5, %54 : vector<8x32xf32>
    %cst_33 = arith.constant dense<0.000000e+00> : vector<8xf32>
    %56 = vector.multi_reduction <add>, %55, %cst_33 [1] : vector<8x32xf32> to vector<8xf32>
    %57 = vector.shape_cast %56 : vector<8xf32> to vector<8x1xf32>
    %58 = vector.broadcast %49 : f32 to vector<8x1xf32>
    %59 = arith.addf %57, %58 : vector<8x1xf32>
    %60 = tpu.transpose %53, [1, 0] : vector<16x1xf32> -> vector<1x16xf32>
    %61 = vector.broadcast %59 : vector<8x1xf32> to vector<8x16xf32>
    %62 = vector.broadcast %60 : vector<1x16xf32> to vector<8x16xf32>
    %63 = arith.addf %61, %62 : vector<8x16xf32>
    %cst_34 = arith.constant 0.000000e+00 : f32
    %64 = vector.broadcast %cst_34 : f32 to vector<8x16xf32>
    %65 = arith.cmpf ogt, %63, %64 : vector<8x16xf32>
    %cst_35 = arith.constant 0.00999999977 : f32
    %66 = vector.broadcast %cst_35 : f32 to vector<8x16xf32>
    %67 = arith.mulf %66, %63 : vector<8x16xf32>
    %68 = arith.select %65, %63, %67 : vector<8x16xi1>, vector<8x16xf32>
    %cst_36 = arith.constant dense<0xFF800000> : vector<8xf32>
    %69 = vector.multi_reduction <maximumf>, %68, %cst_36 [1] : vector<8x16xf32> to vector<8xf32>
    %70 = vector.shape_cast %69 : vector<8xf32> to vector<8x1xf32>
    %71 = vector.broadcast %70 : vector<8x1xf32> to vector<8x16xf32>
    %72 = arith.subf %68, %71 : vector<8x16xf32>
    %73 = math.exp %72 : vector<8x16xf32>
    %cst_37 = arith.constant dense<0.000000e+00> : vector<8xf32>
    %74 = vector.multi_reduction <add>, %73, %cst_37 [1] : vector<8x16xf32> to vector<8xf32>
    %75 = vector.shape_cast %74 : vector<8xf32> to vector<8x1xf32>
    %76 = tpu.reciprocal %75 {approx = true} : vector<8x1xf32> -> vector<8x1xf32>
    %77 = vector.broadcast %76 : vector<8x1xf32> to vector<8x16xf32>
    %78 = arith.mulf %73, %77 : vector<8x16xf32>
    %cst_38 = arith.constant dense<0.000000e+00> : vector<8x32xf32>
    %79 = tpu.matmul %78, %11, %cst_38 {dimension_numbers = #tpu.dot_dimension_numbers<[1], [0], [0], [1], [0, 0, 1, 1], [], []>} : vector<8x16xf32>, vector<16x32xf32>, vector<8x32xf32> -> vector<8x32xf32>
    %c0_39 = arith.constant 0 : index
    %c0_40 = arith.constant 0 : index
    %c0_41 = arith.constant 0 : index
    %80 = vector.load %arg11[%c0_39, %c0_40, %c0_41] : memref<2x32x32xf32, #tpu.memory_space<vmem>>, vector<1x32x32xf32>
    %81 = vector.shape_cast %80 : vector<1x32x32xf32> to vector<32x32xf32>
    %c0_42 = arith.constant 0 : index
    %c0_43 = arith.constant 0 : index
    %82 = vector.load %arg12[%c0_42, %c0_43] : memref<2x32xf32, #tpu.memory_space<vmem>>, vector<1x32xf32>
    %cst_44 = arith.constant dense<0.000000e+00> : vector<8x32xf32>
    %83 = tpu.matmul %79, %81, %cst_44 {dimension_numbers = #tpu.dot_dimension_numbers<[1], [0], [0], [1], [0, 0, 1, 1], [], []>} : vector<8x32xf32>, vector<32x32xf32>, vector<8x32xf32> -> vector<8x32xf32>
    %84 = vector.broadcast %82 : vector<1x32xf32> to vector<8x32xf32>
    %85 = arith.addf %83, %84 : vector<8x32xf32>
    %cst_45 = arith.constant dense<0xFF800000> : vector<8xf32>
    %86 = vector.multi_reduction <maximumf>, %85, %cst_45 [1] : vector<8x32xf32> to vector<8xf32>
    %87 = vector.shape_cast %86 : vector<8xf32> to vector<8x1xf32>
    %88 = vector.broadcast %87 : vector<8x1xf32> to vector<8x32xf32>
    %89 = arith.subf %85, %88 : vector<8x32xf32>
    %90 = math.exp %89 : vector<8x32xf32>
    %cst_46 = arith.constant dense<0.000000e+00> : vector<8xf32>
    %91 = vector.multi_reduction <add>, %90, %cst_46 [1] : vector<8x32xf32> to vector<8xf32>
    %92 = vector.shape_cast %91 : vector<8xf32> to vector<8x1xf32>
    %93 = tpu.reciprocal %92 {approx = true} : vector<8x1xf32> -> vector<8x1xf32>
    %94 = vector.broadcast %93 : vector<8x1xf32> to vector<8x32xf32>
    %95 = arith.mulf %90, %94 : vector<8x32xf32>
    %96 = arith.addf %12, %95 : vector<8x32xf32>
    %cst_47 = arith.constant dense<0.000000e+00> : vector<16x32xf32>
    %97 = tpu.matmul %46, %81, %cst_47 {dimension_numbers = #tpu.dot_dimension_numbers<[1], [0], [0], [1], [0, 0, 1, 1], [], []>} : vector<16x32xf32>, vector<32x32xf32>, vector<16x32xf32> -> vector<16x32xf32>
    %98 = vector.broadcast %82 : vector<1x32xf32> to vector<16x32xf32>
    %99 = arith.addf %97, %98 : vector<16x32xf32>
    %cst_48 = arith.constant dense<0xFF800000> : vector<16xf32>
    %100 = vector.multi_reduction <maximumf>, %99, %cst_48 [1] : vector<16x32xf32> to vector<16xf32>
    %101 = vector.shape_cast %100 : vector<16xf32> to vector<16x1xf32>
    %102 = vector.broadcast %101 : vector<16x1xf32> to vector<16x32xf32>
    %103 = arith.subf %99, %102 : vector<16x32xf32>
    %104 = math.exp %103 : vector<16x32xf32>
    %cst_49 = arith.constant dense<0.000000e+00> : vector<16xf32>
    %105 = vector.multi_reduction <add>, %104, %cst_49 [1] : vector<16x32xf32> to vector<16xf32>
    %106 = vector.shape_cast %105 : vector<16xf32> to vector<16x1xf32>
    %107 = tpu.reciprocal %106 {approx = true} : vector<16x1xf32> -> vector<16x1xf32>
    %108 = vector.broadcast %107 : vector<16x1xf32> to vector<16x32xf32>
    %109 = arith.mulf %104, %108 : vector<16x32xf32>
    %110 = arith.addf %13, %109 : vector<16x32xf32>
    %c1_50 = arith.constant 1 : index
    %c0_51 = arith.constant 0 : index
    %111 = vector.load %arg6[%c1_50, %c0_51] : memref<2x32xf32, #tpu.memory_space<vmem>>, vector<1x32xf32>
    %c1_52 = arith.constant 1 : index
    %c0_53 = arith.constant 0 : index
    %112 = vector.load %arg7[%c1_52, %c0_53] : memref<2x32xf32, #tpu.memory_space<vmem>>, vector<1x32xf32>
    %c1_54 = arith.constant 1 : index
    %c0_55 = arith.constant 0 : index
    %113 = memref.load %arg10[%c1_54, %c0_55] : memref<2x2xf32, #tpu.memory_space<smem>>
    %114 = vector.broadcast %111 : vector<1x32xf32> to vector<8x32xf32>
    %115 = arith.mulf %5, %114 : vector<8x32xf32>
    %cst_56 = arith.constant dense<0.000000e+00> : vector<8xf32>
    %116 = vector.multi_reduction <add>, %115, %cst_56 [1] : vector<8x32xf32> to vector<8xf32>
    %117 = vector.shape_cast %116 : vector<8xf32> to vector<8x1xf32>
    %118 = vector.broadcast %112 : vector<1x32xf32> to vector<16x32xf32>
    %119 = arith.mulf %11, %118 : vector<16x32xf32>
    %cst_57 = arith.constant dense<0.000000e+00> : vector<16xf32>
    %120 = vector.multi_reduction <add>, %119, %cst_57 [1] : vector<16x32xf32> to vector<16xf32>
    %121 = vector.shape_cast %120 : vector<16xf32> to vector<16x1xf32>
    %122 = vector.broadcast %113 : f32 to vector<16x1xf32>
    %123 = arith.addf %121, %122 : vector<16x1xf32>
    %124 = tpu.transpose %117, [1, 0] : vector<8x1xf32> -> vector<1x8xf32>
    %125 = vector.broadcast %123 : vector<16x1xf32> to vector<16x8xf32>
    %126 = vector.broadcast %124 : vector<1x8xf32> to vector<16x8xf32>
    %127 = arith.addf %125, %126 : vector<16x8xf32>
    %cst_58 = arith.constant 0.000000e+00 : f32
    %128 = vector.broadcast %cst_58 : f32 to vector<16x8xf32>
    %129 = arith.cmpf ogt, %127, %128 : vector<16x8xf32>
    %cst_59 = arith.constant 0.00999999977 : f32
    %130 = vector.broadcast %cst_59 : f32 to vector<16x8xf32>
    %131 = arith.mulf %130, %127 : vector<16x8xf32>
    %132 = arith.select %129, %127, %131 : vector<16x8xi1>, vector<16x8xf32>
    %cst_60 = arith.constant dense<0xFF800000> : vector<16xf32>
    %133 = vector.multi_reduction <maximumf>, %132, %cst_60 [1] : vector<16x8xf32> to vector<16xf32>
    %134 = vector.shape_cast %133 : vector<16xf32> to vector<16x1xf32>
    %135 = vector.broadcast %134 : vector<16x1xf32> to vector<16x8xf32>
    %136 = arith.subf %132, %135 : vector<16x8xf32>
    %137 = math.exp %136 : vector<16x8xf32>
    %cst_61 = arith.constant dense<0.000000e+00> : vector<16xf32>
    %138 = vector.multi_reduction <add>, %137, %cst_61 [1] : vector<16x8xf32> to vector<16xf32>
    %139 = vector.shape_cast %138 : vector<16xf32> to vector<16x1xf32>
    %140 = tpu.reciprocal %139 {approx = true} : vector<16x1xf32> -> vector<16x1xf32>
    %141 = vector.broadcast %140 : vector<16x1xf32> to vector<16x8xf32>
    %142 = arith.mulf %137, %141 : vector<16x8xf32>
    %cst_62 = arith.constant dense<0.000000e+00> : vector<16x32xf32>
    %143 = tpu.matmul %142, %5, %cst_62 {dimension_numbers = #tpu.dot_dimension_numbers<[1], [0], [0], [1], [0, 0, 1, 1], [], []>} : vector<16x8xf32>, vector<8x32xf32>, vector<16x32xf32> -> vector<16x32xf32>
    %c1_63 = arith.constant 1 : index
    %c0_64 = arith.constant 0 : index
    %144 = vector.load %arg8[%c1_63, %c0_64] : memref<2x32xf32, #tpu.memory_space<vmem>>, vector<1x32xf32>
    %c1_65 = arith.constant 1 : index
    %c0_66 = arith.constant 0 : index
    %145 = vector.load %arg9[%c1_65, %c0_66] : memref<2x32xf32, #tpu.memory_space<vmem>>, vector<1x32xf32>
    %c1_67 = arith.constant 1 : index
    %c1_68 = arith.constant 1 : index
    %146 = memref.load %arg10[%c1_67, %c1_68] : memref<2x2xf32, #tpu.memory_space<smem>>
    %147 = vector.broadcast %144 : vector<1x32xf32> to vector<16x32xf32>
    %148 = arith.mulf %11, %147 : vector<16x32xf32>
    %cst_69 = arith.constant dense<0.000000e+00> : vector<16xf32>
    %149 = vector.multi_reduction <add>, %148, %cst_69 [1] : vector<16x32xf32> to vector<16xf32>
    %150 = vector.shape_cast %149 : vector<16xf32> to vector<16x1xf32>
    %151 = vector.broadcast %145 : vector<1x32xf32> to vector<8x32xf32>
    %152 = arith.mulf %5, %151 : vector<8x32xf32>
    %cst_70 = arith.constant dense<0.000000e+00> : vector<8xf32>
    %153 = vector.multi_reduction <add>, %152, %cst_70 [1] : vector<8x32xf32> to vector<8xf32>
    %154 = vector.shape_cast %153 : vector<8xf32> to vector<8x1xf32>
    %155 = vector.broadcast %146 : f32 to vector<8x1xf32>
    %156 = arith.addf %154, %155 : vector<8x1xf32>
    %157 = tpu.transpose %150, [1, 0] : vector<16x1xf32> -> vector<1x16xf32>
    %158 = vector.broadcast %156 : vector<8x1xf32> to vector<8x16xf32>
    %159 = vector.broadcast %157 : vector<1x16xf32> to vector<8x16xf32>
    %160 = arith.addf %158, %159 : vector<8x16xf32>
    %cst_71 = arith.constant 0.000000e+00 : f32
    %161 = vector.broadcast %cst_71 : f32 to vector<8x16xf32>
    %162 = arith.cmpf ogt, %160, %161 : vector<8x16xf32>
    %cst_72 = arith.constant 0.00999999977 : f32
    %163 = vector.broadcast %cst_72 : f32 to vector<8x16xf32>
    %164 = arith.mulf %163, %160 : vector<8x16xf32>
    %165 = arith.select %162, %160, %164 : vector<8x16xi1>, vector<8x16xf32>
    %cst_73 = arith.constant dense<0xFF800000> : vector<8xf32>
    %166 = vector.multi_reduction <maximumf>, %165, %cst_73 [1] : vector<8x16xf32> to vector<8xf32>
    %167 = vector.shape_cast %166 : vector<8xf32> to vector<8x1xf32>
    %168 = vector.broadcast %167 : vector<8x1xf32> to vector<8x16xf32>
    %169 = arith.subf %165, %168 : vector<8x16xf32>
    %170 = math.exp %169 : vector<8x16xf32>
    %cst_74 = arith.constant dense<0.000000e+00> : vector<8xf32>
    %171 = vector.multi_reduction <add>, %170, %cst_74 [1] : vector<8x16xf32> to vector<8xf32>
    %172 = vector.shape_cast %171 : vector<8xf32> to vector<8x1xf32>
    %173 = tpu.reciprocal %172 {approx = true} : vector<8x1xf32> -> vector<8x1xf32>
    %174 = vector.broadcast %173 : vector<8x1xf32> to vector<8x16xf32>
    %175 = arith.mulf %170, %174 : vector<8x16xf32>
    %cst_75 = arith.constant dense<0.000000e+00> : vector<8x32xf32>
    %176 = tpu.matmul %175, %11, %cst_75 {dimension_numbers = #tpu.dot_dimension_numbers<[1], [0], [0], [1], [0, 0, 1, 1], [], []>} : vector<8x16xf32>, vector<16x32xf32>, vector<8x32xf32> -> vector<8x32xf32>
    %c1_76 = arith.constant 1 : index
    %c0_77 = arith.constant 0 : index
    %c0_78 = arith.constant 0 : index
    %177 = vector.load %arg11[%c1_76, %c0_77, %c0_78] : memref<2x32x32xf32, #tpu.memory_space<vmem>>, vector<1x32x32xf32>
    %178 = vector.shape_cast %177 : vector<1x32x32xf32> to vector<32x32xf32>
    %c1_79 = arith.constant 1 : index
    %c0_80 = arith.constant 0 : index
    %179 = vector.load %arg12[%c1_79, %c0_80] : memref<2x32xf32, #tpu.memory_space<vmem>>, vector<1x32xf32>
    %cst_81 = arith.constant dense<0.000000e+00> : vector<8x32xf32>
    %180 = tpu.matmul %176, %178, %cst_81 {dimension_numbers = #tpu.dot_dimension_numbers<[1], [0], [0], [1], [0, 0, 1, 1], [], []>} : vector<8x32xf32>, vector<32x32xf32>, vector<8x32xf32> -> vector<8x32xf32>
    %181 = vector.broadcast %179 : vector<1x32xf32> to vector<8x32xf32>
    %182 = arith.addf %180, %181 : vector<8x32xf32>
    %cst_82 = arith.constant dense<0xFF800000> : vector<8xf32>
    %183 = vector.multi_reduction <maximumf>, %182, %cst_82 [1] : vector<8x32xf32> to vector<8xf32>
    %184 = vector.shape_cast %183 : vector<8xf32> to vector<8x1xf32>
    %185 = vector.broadcast %184 : vector<8x1xf32> to vector<8x32xf32>
    %186 = arith.subf %182, %185 : vector<8x32xf32>
    %187 = math.exp %186 : vector<8x32xf32>
    %cst_83 = arith.constant dense<0.000000e+00> : vector<8xf32>
    %188 = vector.multi_reduction <add>, %187, %cst_83 [1] : vector<8x32xf32> to vector<8xf32>
    %189 = vector.shape_cast %188 : vector<8xf32> to vector<8x1xf32>
    %190 = tpu.reciprocal %189 {approx = true} : vector<8x1xf32> -> vector<8x1xf32>
    %191 = vector.broadcast %190 : vector<8x1xf32> to vector<8x32xf32>
    %192 = arith.mulf %187, %191 : vector<8x32xf32>
    %193 = arith.addf %96, %192 : vector<8x32xf32>
    %cst_84 = arith.constant dense<0.000000e+00> : vector<16x32xf32>
    %194 = tpu.matmul %143, %178, %cst_84 {dimension_numbers = #tpu.dot_dimension_numbers<[1], [0], [0], [1], [0, 0, 1, 1], [], []>} : vector<16x32xf32>, vector<32x32xf32>, vector<16x32xf32> -> vector<16x32xf32>
    %195 = vector.broadcast %179 : vector<1x32xf32> to vector<16x32xf32>
    %196 = arith.addf %194, %195 : vector<16x32xf32>
    %cst_85 = arith.constant dense<0xFF800000> : vector<16xf32>
    %197 = vector.multi_reduction <maximumf>, %196, %cst_85 [1] : vector<16x32xf32> to vector<16xf32>
    %198 = vector.shape_cast %197 : vector<16xf32> to vector<16x1xf32>
    %199 = vector.broadcast %198 : vector<16x1xf32> to vector<16x32xf32>
    %200 = arith.subf %196, %199 : vector<16x32xf32>
    %201 = math.exp %200 : vector<16x32xf32>
    %cst_86 = arith.constant dense<0.000000e+00> : vector<16xf32>
    %202 = vector.multi_reduction <add>, %201, %cst_86 [1] : vector<16x32xf32> to vector<16xf32>
    %203 = vector.shape_cast %202 : vector<16xf32> to vector<16x1xf32>
    %204 = tpu.reciprocal %203 {approx = true} : vector<16x1xf32> -> vector<16x1xf32>
    %205 = vector.broadcast %204 : vector<16x1xf32> to vector<16x32xf32>
    %206 = arith.mulf %201, %205 : vector<16x32xf32>
    %207 = arith.addf %110, %206 : vector<16x32xf32>
    %cst_87 = arith.constant 5.000000e-01 : f32
    %208 = vector.broadcast %cst_87 : f32 to vector<8x32xf32>
    %209 = arith.mulf %193, %208 : vector<8x32xf32>
    %cst_88 = arith.constant 0.000000e+00 : f32
    %210 = vector.broadcast %cst_88 : f32 to vector<8x32xf32>
    %211 = arith.cmpf ogt, %209, %210 : vector<8x32xf32>
    %cst_89 = arith.constant 0.000000e+00 : f32
    %212 = vector.broadcast %cst_89 : f32 to vector<8x32xf32>
    %213 = arith.minimumf %209, %212 : vector<8x32xf32>
    %214 = math.exp %213 : vector<8x32xf32>
    %cst_90 = arith.constant 1.000000e+00 : f32
    %215 = vector.broadcast %cst_90 : f32 to vector<8x32xf32>
    %216 = arith.subf %214, %215 : vector<8x32xf32>
    %217 = arith.select %211, %209, %216 : vector<8x32xi1>, vector<8x32xf32>
    %cst_91 = arith.constant 5.000000e-01 : f32
    %218 = vector.broadcast %cst_91 : f32 to vector<16x32xf32>
    %219 = arith.mulf %207, %218 : vector<16x32xf32>
    %cst_92 = arith.constant 0.000000e+00 : f32
    %220 = vector.broadcast %cst_92 : f32 to vector<16x32xf32>
    %221 = arith.cmpf ogt, %219, %220 : vector<16x32xf32>
    %cst_93 = arith.constant 0.000000e+00 : f32
    %222 = vector.broadcast %cst_93 : f32 to vector<16x32xf32>
    %223 = arith.minimumf %219, %222 : vector<16x32xf32>
    %224 = math.exp %223 : vector<16x32xf32>
    %cst_94 = arith.constant 1.000000e+00 : f32
    %225 = vector.broadcast %cst_94 : f32 to vector<16x32xf32>
    %226 = arith.subf %224, %225 : vector<16x32xf32>
    %227 = arith.select %221, %219, %226 : vector<16x32xi1>, vector<16x32xf32>
    %c0_95 = arith.constant 0 : index
    %c0_96 = arith.constant 0 : index
    %228 = vector.load %arg13[%c0_95, %c0_96] : memref<1x32xf32, #tpu.memory_space<vmem>>, vector<1x32xf32>
    %c0_97 = arith.constant 0 : index
    %c0_98 = arith.constant 0 : index
    %229 = vector.load %arg14[%c0_97, %c0_98] : memref<1x32xf32, #tpu.memory_space<vmem>>, vector<1x32xf32>
    %c0_99 = arith.constant 0 : index
    %c0_100 = arith.constant 0 : index
    %230 = memref.load %arg17[%c0_99, %c0_100] : memref<1x2xf32, #tpu.memory_space<smem>>
    %231 = vector.broadcast %228 : vector<1x32xf32> to vector<8x32xf32>
    %232 = arith.mulf %217, %231 : vector<8x32xf32>
    %cst_101 = arith.constant dense<0.000000e+00> : vector<8xf32>
    %233 = vector.multi_reduction <add>, %232, %cst_101 [1] : vector<8x32xf32> to vector<8xf32>
    %234 = vector.shape_cast %233 : vector<8xf32> to vector<8x1xf32>
    %235 = vector.broadcast %229 : vector<1x32xf32> to vector<16x32xf32>
    %236 = arith.mulf %227, %235 : vector<16x32xf32>
    %cst_102 = arith.constant dense<0.000000e+00> : vector<16xf32>
    %237 = vector.multi_reduction <add>, %236, %cst_102 [1] : vector<16x32xf32> to vector<16xf32>
    %238 = vector.shape_cast %237 : vector<16xf32> to vector<16x1xf32>
    %239 = vector.broadcast %230 : f32 to vector<16x1xf32>
    %240 = arith.addf %238, %239 : vector<16x1xf32>
    %241 = tpu.transpose %234, [1, 0] : vector<8x1xf32> -> vector<1x8xf32>
    %242 = vector.broadcast %240 : vector<16x1xf32> to vector<16x8xf32>
    %243 = vector.broadcast %241 : vector<1x8xf32> to vector<16x8xf32>
    %244 = arith.addf %242, %243 : vector<16x8xf32>
    %cst_103 = arith.constant 0.000000e+00 : f32
    %245 = vector.broadcast %cst_103 : f32 to vector<16x8xf32>
    %246 = arith.cmpf ogt, %244, %245 : vector<16x8xf32>
    %cst_104 = arith.constant 0.00999999977 : f32
    %247 = vector.broadcast %cst_104 : f32 to vector<16x8xf32>
    %248 = arith.mulf %247, %244 : vector<16x8xf32>
    %249 = arith.select %246, %244, %248 : vector<16x8xi1>, vector<16x8xf32>
    %cst_105 = arith.constant dense<0xFF800000> : vector<16xf32>
    %250 = vector.multi_reduction <maximumf>, %249, %cst_105 [1] : vector<16x8xf32> to vector<16xf32>
    %251 = vector.shape_cast %250 : vector<16xf32> to vector<16x1xf32>
    %252 = vector.broadcast %251 : vector<16x1xf32> to vector<16x8xf32>
    %253 = arith.subf %249, %252 : vector<16x8xf32>
    %254 = math.exp %253 : vector<16x8xf32>
    %cst_106 = arith.constant dense<0.000000e+00> : vector<16xf32>
    %255 = vector.multi_reduction <add>, %254, %cst_106 [1] : vector<16x8xf32> to vector<16xf32>
    %256 = vector.shape_cast %255 : vector<16xf32> to vector<16x1xf32>
    %257 = tpu.reciprocal %256 {approx = true} : vector<16x1xf32> -> vector<16x1xf32>
    %258 = vector.broadcast %257 : vector<16x1xf32> to vector<16x8xf32>
    %259 = arith.mulf %254, %258 : vector<16x8xf32>
    %cst_107 = arith.constant dense<0.000000e+00> : vector<16x32xf32>
    %260 = tpu.matmul %259, %217, %cst_107 {dimension_numbers = #tpu.dot_dimension_numbers<[1], [0], [0], [1], [0, 0, 1, 1], [], []>} : vector<16x8xf32>, vector<8x32xf32>, vector<16x32xf32> -> vector<16x32xf32>
    %c0_108 = arith.constant 0 : index
    %c0_109 = arith.constant 0 : index
    %261 = vector.load %arg15[%c0_108, %c0_109] : memref<1x32xf32, #tpu.memory_space<vmem>>, vector<1x32xf32>
    %c0_110 = arith.constant 0 : index
    %c0_111 = arith.constant 0 : index
    %262 = vector.load %arg16[%c0_110, %c0_111] : memref<1x32xf32, #tpu.memory_space<vmem>>, vector<1x32xf32>
    %c0_112 = arith.constant 0 : index
    %c1_113 = arith.constant 1 : index
    %263 = memref.load %arg17[%c0_112, %c1_113] : memref<1x2xf32, #tpu.memory_space<smem>>
    %264 = vector.broadcast %261 : vector<1x32xf32> to vector<16x32xf32>
    %265 = arith.mulf %227, %264 : vector<16x32xf32>
    %cst_114 = arith.constant dense<0.000000e+00> : vector<16xf32>
    %266 = vector.multi_reduction <add>, %265, %cst_114 [1] : vector<16x32xf32> to vector<16xf32>
    %267 = vector.shape_cast %266 : vector<16xf32> to vector<16x1xf32>
    %268 = vector.broadcast %262 : vector<1x32xf32> to vector<8x32xf32>
    %269 = arith.mulf %217, %268 : vector<8x32xf32>
    %cst_115 = arith.constant dense<0.000000e+00> : vector<8xf32>
    %270 = vector.multi_reduction <add>, %269, %cst_115 [1] : vector<8x32xf32> to vector<8xf32>
    %271 = vector.shape_cast %270 : vector<8xf32> to vector<8x1xf32>
    %272 = vector.broadcast %263 : f32 to vector<8x1xf32>
    %273 = arith.addf %271, %272 : vector<8x1xf32>
    %274 = tpu.transpose %267, [1, 0] : vector<16x1xf32> -> vector<1x16xf32>
    %275 = vector.broadcast %273 : vector<8x1xf32> to vector<8x16xf32>
    %276 = vector.broadcast %274 : vector<1x16xf32> to vector<8x16xf32>
    %277 = arith.addf %275, %276 : vector<8x16xf32>
    %cst_116 = arith.constant 0.000000e+00 : f32
    %278 = vector.broadcast %cst_116 : f32 to vector<8x16xf32>
    %279 = arith.cmpf ogt, %277, %278 : vector<8x16xf32>
    %cst_117 = arith.constant 0.00999999977 : f32
    %280 = vector.broadcast %cst_117 : f32 to vector<8x16xf32>
    %281 = arith.mulf %280, %277 : vector<8x16xf32>
    %282 = arith.select %279, %277, %281 : vector<8x16xi1>, vector<8x16xf32>
    %cst_118 = arith.constant dense<0xFF800000> : vector<8xf32>
    %283 = vector.multi_reduction <maximumf>, %282, %cst_118 [1] : vector<8x16xf32> to vector<8xf32>
    %284 = vector.shape_cast %283 : vector<8xf32> to vector<8x1xf32>
    %285 = vector.broadcast %284 : vector<8x1xf32> to vector<8x16xf32>
    %286 = arith.subf %282, %285 : vector<8x16xf32>
    %287 = math.exp %286 : vector<8x16xf32>
    %cst_119 = arith.constant dense<0.000000e+00> : vector<8xf32>
    %288 = vector.multi_reduction <add>, %287, %cst_119 [1] : vector<8x16xf32> to vector<8xf32>
    %289 = vector.shape_cast %288 : vector<8xf32> to vector<8x1xf32>
    %290 = tpu.reciprocal %289 {approx = true} : vector<8x1xf32> -> vector<8x1xf32>
    %291 = vector.broadcast %290 : vector<8x1xf32> to vector<8x16xf32>
    %292 = arith.mulf %287, %291 : vector<8x16xf32>
    %cst_120 = arith.constant dense<0.000000e+00> : vector<8x32xf32>
    %293 = tpu.matmul %292, %227, %cst_120 {dimension_numbers = #tpu.dot_dimension_numbers<[1], [0], [0], [1], [0, 0, 1, 1], [], []>} : vector<8x16xf32>, vector<16x32xf32>, vector<8x32xf32> -> vector<8x32xf32>
    %c0_121 = arith.constant 0 : index
    %c0_122 = arith.constant 0 : index
    %294 = vector.load %arg18[%c0_121, %c0_122] : memref<32x8xf32, #tpu.memory_space<vmem>>, vector<32x8xf32>
    %c0_123 = arith.constant 0 : index
    %c0_124 = arith.constant 0 : index
    %295 = vector.load %arg19[%c0_123, %c0_124] : memref<1x8xf32, #tpu.memory_space<vmem>>, vector<1x8xf32>
    %cst_125 = arith.constant dense<0.000000e+00> : vector<8x8xf32>
    %296 = tpu.matmul %293, %294, %cst_125 {dimension_numbers = #tpu.dot_dimension_numbers<[1], [0], [0], [1], [0, 0, 1, 1], [], []>} : vector<8x32xf32>, vector<32x8xf32>, vector<8x8xf32> -> vector<8x8xf32>
    %297 = vector.broadcast %295 : vector<1x8xf32> to vector<8x8xf32>
    %298 = arith.addf %296, %297 : vector<8x8xf32>
    %cst_126 = arith.constant dense<0xFF800000> : vector<8xf32>
    %299 = vector.multi_reduction <maximumf>, %298, %cst_126 [1] : vector<8x8xf32> to vector<8xf32>
    %300 = vector.shape_cast %299 : vector<8xf32> to vector<8x1xf32>
    %301 = vector.broadcast %300 : vector<8x1xf32> to vector<8x8xf32>
    %302 = arith.subf %298, %301 : vector<8x8xf32>
    %303 = math.exp %302 : vector<8x8xf32>
    %cst_127 = arith.constant dense<0.000000e+00> : vector<8xf32>
    %304 = vector.multi_reduction <add>, %303, %cst_127 [1] : vector<8x8xf32> to vector<8xf32>
    %305 = vector.shape_cast %304 : vector<8xf32> to vector<8x1xf32>
    %306 = vector.broadcast %305 : vector<8x1xf32> to vector<8x8xf32>
    %307 = arith.divf %303, %306 : vector<8x8xf32>
    %c0_128 = arith.constant 0 : index
    %c0_129 = arith.constant 0 : index
    %308 = vector.load %arg20[%c0_128, %c0_129] : memref<8x8xf32, #tpu.memory_space<vmem>>, vector<8x8xf32>
    tpu.vector_store %arg20[%c0_128, %c0_129], %307 {strides = array<i32>} : memref<8x8xf32, #tpu.memory_space<vmem>>, vector<8x8xf32>,
    %cst_130 = arith.constant dense<0.000000e+00> : vector<16x8xf32>
    %309 = tpu.matmul %260, %294, %cst_130 {dimension_numbers = #tpu.dot_dimension_numbers<[1], [0], [0], [1], [0, 0, 1, 1], [], []>} : vector<16x32xf32>, vector<32x8xf32>, vector<16x8xf32> -> vector<16x8xf32>
    %310 = vector.broadcast %295 : vector<1x8xf32> to vector<16x8xf32>
    %311 = arith.addf %309, %310 : vector<16x8xf32>
    %cst_131 = arith.constant dense<0xFF800000> : vector<16xf32>
    %312 = vector.multi_reduction <maximumf>, %311, %cst_131 [1] : vector<16x8xf32> to vector<16xf32>
    %313 = vector.shape_cast %312 : vector<16xf32> to vector<16x1xf32>
    %314 = vector.broadcast %313 : vector<16x1xf32> to vector<16x8xf32>
    %315 = arith.subf %311, %314 : vector<16x8xf32>
    %316 = math.exp %315 : vector<16x8xf32>
    %cst_132 = arith.constant dense<0.000000e+00> : vector<16xf32>
    %317 = vector.multi_reduction <add>, %316, %cst_132 [1] : vector<16x8xf32> to vector<16xf32>
    %318 = vector.shape_cast %317 : vector<16xf32> to vector<16x1xf32>
    %319 = vector.broadcast %318 : vector<16x1xf32> to vector<16x8xf32>
    %320 = arith.divf %316, %319 : vector<16x8xf32>
    %c0_133 = arith.constant 0 : index
    %c0_134 = arith.constant 0 : index
    %321 = vector.load %arg21[%c0_133, %c0_134] : memref<16x8xf32, #tpu.memory_space<vmem>>, vector<16x8xf32>
    tpu.vector_store %arg21[%c0_133, %c0_134], %320 {strides = array<i32>} : memref<16x8xf32, #tpu.memory_space<vmem>>, vector<16x8xf32>,
    return
  }
}

</mosaic_0001>

<bundles_post_ra>
// kernel: gaton_forward.1
= control target key start
LH: loop header
LB: loop body
LE: loop exit
PB: predicated region body
PF: predicated region fallthrough
CT: control target
= control target key end

     0   :  { %s3065_s0 = inlined_call_operand.vmem [shape: f32[8,32], index: 0, kind: input, shape index: {}]   ;;  %s3066_s1 = inlined_call_operand.vmem [shape: f32[16,16], index: 1, kind: input, shape index: {}]   ;;  %s3067_s2 = inlined_call_operand.vmem [shape: f32[32,32], index: 2, kind: input, shape index: {}]   ;;  %s3068_s3 = inlined_call_operand.hbm [shape: f32[1,32], index: 3, kind: input, shape index: {}]   ;;  %s3069_s4 = inlined_call_operand.vmem [shape: f32[16,32], index: 4, kind: input, shape index: {}]   ;;  %s3070_s5 = inlined_call_operand.hbm [shape: f32[1,32], index: 5, kind: input, shape index: {}]   ;;  %s3071_s6 = inlined_call_operand.hbm [shape: f32[2,32], index: 6, kind: input, shape index: {}]   ;;  %s3072_s7 = inlined_call_operand.hbm [shape: f32[2,32], index: 7, kind: input, shape index: {}]   ;;  %s3073_s8 = inlined_call_operand.hbm [shape: f32[2,32], index: 8, kind: input, shape index: {}]   ;;  %s3074_s9 = inlined_call_operand.hbm [shape: f32[2,32], index: 9, kind: input, shape index: {}]   ;;  %s3075_s10 = inlined_call_operand.hbm [shape: f32[2,2], index: 10, kind: input, shape index: {}]   ;;  %s3076_s11 = inlined_call_operand.hbm [shape: f32[2,32,32], index: 11, kind: input, shape index: {}]   ;;  %s3077_s12 = inlined_call_operand.hbm [shape: f32[2,32], index: 12, kind: input, shape index: {}]   ;;  %s3078_s13 = inlined_call_operand.hbm [shape: f32[1,32], index: 13, kind: input, shape index: {}]   ;;  %s3079_s14 = inlined_call_operand.hbm [shape: f32[1,32], index: 14, kind: input, shape index: {}]   ;;  %s3080_s15 = inlined_call_operand.hbm [shape: f32[1,32], index: 15, kind: input, shape index: {}]   ;;  %s3081_s16 = inlined_call_operand.hbm [shape: f32[1,32], index: 16, kind: input, shape index: {}]   ;;  %s3082_s17 = inlined_call_operand.hbm [shape: f32[1,2], index: 17, kind: input, shape index: {}]   ;;  %s3083_s18 = inlined_call_operand.vmem [shape: f32[32,8], index: 18, kind: input, shape index: {}]   ;;  %s3084_s19 = inlined_call_operand.hbm [shape: f32[1,8], index: 19, kind: input, shape index: {}]   ;;  %s3085_s20 = inlined_call_operand.hbm [shape: f32[8,8], index: 20, kind: output, shape index: {0}]   ;;  %s3086_s21 = inlined_call_operand.vmem [shape: f32[16,8], index: 21, kind: output, shape index: {1}]  }
   0x1   :  { %3090 = sst [smem:[#allocation40_spill]] %s3065_s0 }
   0x2   :  { %3091 = sst [smem:[#allocation41_spill]] %s3066_s1 }
   0x3   :  { %3092 = sst [smem:[#allocation42_spill]] %s3067_s2 }
   0x4   :  { %3093 = sst [smem:[#allocation43_spill]] %s3068_s3 }
   0x5   :  { %3094 = sst [smem:[#allocation44_spill]] %s3069_s4 }
   0x6   :  { %3095 = sst [smem:[#allocation45_spill]] %s3070_s5 }
   0x7   :  { %27 = vsyncpa [#allocation3], 0 }
   0x8   :  { %28 = vsyncpa [#allocation7], 0 }
   0x9   :  { %29 = vsyncpa [#allocation10], 0 }
   0xa   :  { %30 = vsyncpa [#allocation13], 0 }
   0xb   :  { %31 = vsyncpa [#allocation5], 0 }
   0xc   :  { %32 = vsyncpa [#allocation17], 0 }
   0xd   :  { %33 = vsyncpa [#allocation20], 0 }
   0xe   :  { %34 = vsyncpa [#allocation23], 0 }
   0xf   :  { %35 = vsyncpa [#allocation25], 0 }
  0x10   :  { %36 = vsyncpa [#allocation4], 0  ;;  %s2686_s2 = smov [#allocation6]   ;;  %s2687_s26 = smov [#allocation9]  }
  0x11   :  { %s61_s25 = sshll.u32 %s2686_s2, 4  ;;  %s81_s27 = sshll.u32 %s2687_s26, 4  ;;  %s62_s25 = int_to_ptr.vmem [resolvable:$true] %s61_s25  ;;  %s82_s27 = int_to_ptr.vmem [resolvable:$true] %s81_s27 }
  0x12   :  { %s2374_s3 = scalar_lea.vmem %s62_s25, 16  ;;  %s2378_s28 = scalar_lea.vmem %s62_s25, 32 }
  0x13   :  { %p2375_p0 = scmp.ne.s32.totalorder %s62_s25, %s2374_s3  ;;  %p2379_p1 = scmp.lt.s32.totalorder %s62_s25, %s62_s25 }
  0x14   :  { %p2380_p2 = scmp.lt.s32.totalorder %s2378_s28, %s2374_s3 }
  0x16   :  { %p2381_p3 = por %p2380_p2, %p2379_p1 }
  0x18   :  { %p2382_p4 = pnand %p2381_p3, %p2375_p0 }
  0x1a   :  { %2385 = shalt.err (!%p2382_p4)
}
  0x1b   :  { %s3096_s4 = sld [smem:[#allocation45_spill]]  ;;  %s2394_s30 = scalar_lea.vmem %s82_s27, 32 }
  0x1c   :  { %p2395_p5 = scmp.ne.s32.totalorder %s82_s27, %s2394_s30  ;;  %p2399_p6 = scmp.lt.s32.totalorder %s82_s27, %s82_s27 }
  0x1d   :  { %p2400_p7 = scmp.lt.s32.totalorder %s2394_s30, %s2394_s30 }
  0x1f   :  { %p2401_p8 = por %p2400_p7, %p2399_p6 }
  0x21   :  { %64 = dma.hbm_to_vmem [thread:$0]  %s3096_s4, 16, %s62_s25, [#allocation7]  }
  0x22   :  { %p2402_p9 = pnand %p2401_p8, %p2395_p5 }
  0x24   :  { %2405 = shalt.err (!%p2402_p9)
}
  0x25   :  { %84 = dma.hbm_to_vmem [thread:$0]  %s3072_s7, 32, %s82_s27, [#allocation10]  }
  0x26   :  { %s2688_s23 = smov [#allocation12]   ;;  %s2689_s24 = smov [#allocation16]  }
  0x27   :  { %s101_s1 = sshll.u32 %s2688_s23, 4  ;;  %s131_s2 = sshll.u32 %s2689_s24, 4  ;;  %s102_s1 = int_to_ptr.vmem [resolvable:$true] %s101_s1  ;;  %s132_s2 = int_to_ptr.vmem [resolvable:$true] %s131_s2 }
  0x28   :  { %s2414_s26 = scalar_lea.vmem %s102_s1, 32  ;;  %p2419_p11 = scmp.lt.s32.totalorder %s102_s1, %s102_s1 }
  0x29   :  { %p2415_p10 = scmp.ne.s32.totalorder %s102_s1, %s2414_s26  ;;  %p2420_p12 = scmp.lt.s32.totalorder %s2414_s26, %s2414_s26 }
  0x2b   :  { %p2421_p13 = por %p2420_p12, %p2419_p11 }
  0x2d   :  { %p2422_p0 = pnand %p2421_p13, %p2415_p10 }
  0x2f   :  { %2425 = shalt.err (!%p2422_p0)
}
  0x30   :  { %104 = dma.hbm_to_vmem [thread:$0]  %s3074_s9, 32, %s102_s1, [#allocation13]  }
  0x31   :  { %s2434_s28 = scalar_lea.vmem %s132_s2, 32  ;;  %p2439_p2 = scmp.lt.s32.totalorder %s132_s2, %s132_s2 }
  0x32   :  { %p2435_p1 = scmp.ne.s32.totalorder %s132_s2, %s2434_s28  ;;  %p2440_p3 = scmp.lt.s32.totalorder %s2434_s28, %s2434_s28 }
  0x34   :  { %p2441_p4 = por %p2440_p3, %p2439_p2 }
  0x36   :  { %p2442_p5 = pnand %p2441_p4, %p2435_p1 }
  0x38   :  { %2445 = shalt.err (!%p2442_p5)
}
  0x39   :  { %134 = dma.hbm_to_vmem [thread:$0]  %s3077_s12, 32, %s132_s2, [#allocation17]  }
  0x3a   :  { %s2690_s29 = smov [#allocation19]   ;;  %s2691_s4 = smov [#allocation22]  }
  0x3b   :  { %s151_s0 = sshll.u32 %s2690_s29, 4  ;;  %s171_s30 = sshll.u32 %s2691_s4, 4  ;;  %s152_s0 = int_to_ptr.vmem [resolvable:$true] %s151_s0  ;;  %s172_s30 = int_to_ptr.vmem [resolvable:$true] %s171_s30 }
  0x3c   :  { %s2454_s5 = scalar_lea.vmem %s152_s0, 16  ;;  %s2458_s9 = scalar_lea.vmem %s152_s0, 32 }
  0x3d   :  { %p2455_p6 = scmp.ne.s32.totalorder %s152_s0, %s2454_s5  ;;  %p2459_p7 = scmp.lt.s32.totalorder %s152_s0, %s152_s0 }
  0x3e   :  { %p2460_p8 = scmp.lt.s32.totalorder %s2458_s9, %s2454_s5 }
  0x40   :  { %p2461_p9 = por %p2460_p8, %p2459_p7 }
  0x42   :  { %p2462_p10 = pnand %p2461_p9, %p2455_p6 }
  0x44   :  { %2465 = shalt.err (!%p2462_p10)
}
  0x45   :  { %154 = dma.hbm_to_vmem [thread:$0]  %s3079_s14, 16, %s152_s0, [#allocation20]  }
  0x46   :  { %s2474_s1 = scalar_lea.vmem %s172_s30, 16  ;;  %s2478_s12 = scalar_lea.vmem %s172_s30, 32 }
  0x47   :  { %p2475_p11 = scmp.ne.s32.totalorder %s172_s30, %s2474_s1  ;;  %p2479_p12 = scmp.lt.s32.totalorder %s172_s30, %s172_s30 }
  0x48   :  { %p2480_p13 = scmp.lt.s32.totalorder %s2478_s12, %s2474_s1 }
  0x4a   :  { %p2481_p0 = por %p2480_p13, %p2479_p12 }
  0x4c   :  { %p2482_p1 = pnand %p2481_p0, %p2475_p11 }
  0x4e   :  { %2485 = shalt.err (!%p2482_p1)
}
  0x4f   :  { %174 = dma.hbm_to_vmem [thread:$0]  %s3081_s16, 16, %s172_s30, [#allocation23]  }
  0x50   :  { %s2692_s26 = smov [#allocation2]   ;;  %s2693_s3 = smov [#allocation8]  }
  0x51   :  { %s49_s25 = sshll.u32 %s2692_s26, 4  ;;  %s71_s28 = sshll.u32 %s2693_s3, 4  ;;  %s50_s25 = int_to_ptr.vmem [resolvable:$true] %s49_s25  ;;  %s72_s28 = int_to_ptr.vmem [resolvable:$true] %s71_s28 }
  0x52   :  { %s2494_s7 = scalar_lea.vmem %s50_s25, 16  ;;  %s2498_s14 = scalar_lea.vmem %s50_s25, 32 }
  0x53   :  { %p2495_p2 = scmp.ne.s32.totalorder %s50_s25, %s2494_s7  ;;  %p2499_p3 = scmp.lt.s32.totalorder %s50_s25, %s50_s25 }
  0x54   :  { %p2500_p4 = scmp.lt.s32.totalorder %s2498_s14, %s2494_s7 }
  0x56   :  { %p2501_p5 = por %p2500_p4, %p2499_p3 }
  0x58   :  { %p2502_p6 = pnand %p2501_p5, %p2495_p2 }
  0x5a   :  { %2505 = shalt.err (!%p2502_p6)
}
  0x5b   :  { %s3097_s0 = sld [smem:[#allocation43_spill]]  ;;  %s2514_s4 = scalar_lea.vmem %s72_s28, 32 }
  0x5c   :  { %p2515_p7 = scmp.ne.s32.totalorder %s72_s28, %s2514_s4  ;;  %p2519_p8 = scmp.lt.s32.totalorder %s72_s28, %s72_s28 }
  0x5d   :  { %p2520_p9 = scmp.lt.s32.totalorder %s2514_s4, %s2514_s4 }
  0x5f   :  { %p2521_p10 = por %p2520_p9, %p2519_p8 }
  0x61   :  { %52 = dma.hbm_to_vmem [thread:$0]  %s3097_s0, 16, %s50_s25, [#allocation3]  }
  0x62   :  { %p2522_p11 = pnand %p2521_p10, %p2515_p7 }
  0x64   :  { %2525 = shalt.err (!%p2522_p11)
}
  0x65   :  { %74 = dma.hbm_to_vmem [thread:$0]  %s3071_s6, 32, %s72_s28, [#allocation7]  }
  0x66   :  { %s2694_s5 = smov [#allocation11]   ;;  %s2695_s22 = smov [#allocation15]  }
  0x67   :  { %s91_s9 = sshll.u32 %s2694_s5, 4  ;;  %s118_s23 = sshll.u32 %s2695_s22, 4  ;;  %s92_s9 = int_to_ptr.vmem [resolvable:$true] %s91_s9  ;;  %s119_s23 = int_to_ptr.vmem [resolvable:$true] %s118_s23 }
  0x68   :  { %s2534_s1 = scalar_lea.vmem %s92_s9, 32  ;;  %p2539_p13 = scmp.lt.s32.totalorder %s92_s9, %s92_s9 }
  0x69   :  { %p2535_p12 = scmp.ne.s32.totalorder %s92_s9, %s2534_s1  ;;  %p2540_p0 = scmp.lt.s32.totalorder %s2534_s1, %s2534_s1 }
  0x6b   :  { %p2541_p1 = por %p2540_p0, %p2539_p13 }
  0x6d   :  { %p2542_p2 = pnand %p2541_p1, %p2535_p12 }
  0x6f   :  { %2545 = shalt.err (!%p2542_p2)
}
  0x70   :  { %94 = dma.hbm_to_vmem [thread:$0]  %s3073_s8, 32, %s92_s9, [#allocation10]  }
  0x71   :  { %s2696_s2 = smov [#allocation14]   ;;  %s2562_s6 = scalar_lea.vmem %s119_s23, 1024 }
  0x72   :  { %112 = dma.hbm_to_smem %s3075_s10, 32, %s2696_s2, [#allocation5]  }
  0x73   :  { %p2563_p3 = scmp.ne.s32.totalorder %s119_s23, %s2562_s6  ;;  %p2567_p4 = scmp.lt.s32.totalorder %s119_s23, %s119_s23 }
  0x74   :  { %p2568_p5 = scmp.lt.s32.totalorder %s2562_s6, %s2562_s6 }
  0x76   :  { %p2569_p6 = por %p2568_p5, %p2567_p4 }
  0x78   :  { %p2570_p7 = pnand %p2569_p6, %p2563_p3 }
  0x7a   :  { %2573 = shalt.err (!%p2570_p7)
}
  0x7b   :  { %s2697_s3 = smov 128   ;;  %s2698_s28 = smov 8  }
  0x7c   :  { %124 = dma.hbm_to_vmem [thread:$0]  %s3076_s11, 1024, %s119_s23, [#allocation13], %s2697_s3, %s2697_s3, %s2698_s28  }
  0x7d   :  { %s2699_s8 = smov [#allocation18]   ;;  %s2700_s29 = smov [#allocation21]  }
  0x7e   :  { %s141_s27 = sshll.u32 %s2699_s8, 4  ;;  %s161_s0 = sshll.u32 %s2700_s29, 4  ;;  %s142_s27 = int_to_ptr.vmem [resolvable:$true] %s141_s27  ;;  %s162_s0 = int_to_ptr.vmem [resolvable:$true] %s161_s0 }
  0x7f   :  { %s2582_s10 = scalar_lea.vmem %s142_s27, 16  ;;  %s2586_s4 = scalar_lea.vmem %s142_s27, 32 }
  0x80   :  { %p2583_p8 = scmp.ne.s32.totalorder %s142_s27, %s2582_s10  ;;  %p2587_p9 = scmp.lt.s32.totalorder %s142_s27, %s142_s27 }
  0x81   :  { %p2588_p10 = scmp.lt.s32.totalorder %s2586_s4, %s2582_s10 }
  0x83   :  { %p2589_p11 = por %p2588_p10, %p2587_p9 }
  0x85   :  { %p2590_p12 = pnand %p2589_p11, %p2583_p8 }
  0x87   :  { %2593 = shalt.err (!%p2590_p12)
}
  0x88   :  { %144 = dma.hbm_to_vmem [thread:$0]  %s3078_s13, 16, %s142_s27, [#allocation17]  }
  0x89   :  { %s2602_s5 = scalar_lea.vmem %s162_s0, 16  ;;  %s2606_s11 = scalar_lea.vmem %s162_s0, 32 }
  0x8a   :  { %p2603_p13 = scmp.ne.s32.totalorder %s162_s0, %s2602_s5  ;;  %p2607_p0 = scmp.lt.s32.totalorder %s162_s0, %s162_s0 }
  0x8b   :  { %p2608_p1 = scmp.lt.s32.totalorder %s2606_s11, %s2602_s5 }
  0x8d   :  { %p2609_p2 = por %p2608_p1, %p2607_p0 }
  0x8f   :  { %p2610_p3 = pnand %p2609_p2, %p2603_p13 }
  0x91   :  { %2613 = shalt.err (!%p2610_p3)
}
  0x92   :  { %164 = dma.hbm_to_vmem [thread:$0]  %s3080_s15, 16, %s162_s0, [#allocation20]  }
  0x93   :  { %s2701_s23 = smov [#allocation24]   ;;  %s2702_s24 = smov [#allocation26]  }
  0x94   :  { %182 = dma.hbm_to_smem %s3082_s17, 16, %s2701_s23, [#allocation25]  }
  0x95   :  { %s191_s13 = sshll.u32 %s2702_s24, 4  ;;  %s192_s13 = int_to_ptr.vmem [resolvable:$true] %s191_s13 }
  0x96   :  { %s2630_s2 = scalar_lea.vmem %s192_s13, 16  ;;  %s2634_s26 = scalar_lea.vmem %s192_s13, 32 }
  0x97   :  { %p2631_p4 = scmp.ne.s32.totalorder %s192_s13, %s2630_s2  ;;  %p2635_p5 = scmp.lt.s32.totalorder %s192_s13, %s192_s13 }
  0x98   :  { %p2636_p6 = scmp.lt.s32.totalorder %s2634_s26, %s2630_s2 }
  0x9a   :  { %p2637_p7 = por %p2636_p6, %p2635_p5 }
  0x9c   :  { %p2638_p8 = pnand %p2637_p7, %p2631_p4 }
  0x9e   :  { %2641 = shalt.err (!%p2638_p8)
}
  0x9f   :  { %194 = dma.hbm_to_vmem [thread:$0]  %s3084_s19, 16, %s192_s13, [#allocation23]  }
  0xa0   :  { %2662 = dma.done.wait [#allocation3], 16  }
  0xa1   :  { %2663 = vsyncadd [#allocation3], 4294967280 }
  0xa2   :  { %2664 = dma.done.wait [#allocation7], 48  }
  0xa3   :  { %2665 = vsyncadd [#allocation7], 4294967248 }
  0xa4   :  { %2666 = dma.done.wait [#allocation10], 64  }
  0xa5   :  { %2667 = vsyncadd [#allocation10], 4294967232 }
  0xa6   :  { %2668 = dma.done.wait [#allocation13], 32  }
  0xa7   :  { %2669 = vsyncadd [#allocation13], 4294967264 }
  0xa8   :  { %2670 = dma.done.wait [#allocation5], 32  }
  0xa9   :  { %2671 = vsyncadd [#allocation5], 4294967264 }
  0xaa   :  { %2672 = dma.done.wait [#allocation13], 1024  }
  0xab   :  { %2673 = vsyncadd [#allocation13], 4294966272 }
  0xac   :  { %2674 = dma.done.wait [#allocation17], 48  }
  0xad   :  { %2675 = vsyncadd [#allocation17], 4294967248 }
  0xae   :  { %2676 = dma.done.wait [#allocation20], 32  }
  0xaf   :  { %2677 = vsyncadd [#allocation20], 4294967264 }
  0xb0   :  { %2678 = dma.done.wait [#allocation23], 16  }
  0xb1   :  { %2679 = vsyncadd [#allocation23], 4294967280 }
  0xb2   :  { %2680 = dma.done.wait [#allocation25], 16  }
  0xb3   :  { %2681 = vsyncadd [#allocation25], 4294967280 }
  0xb4   :  { %2682 = dma.done.wait [#allocation23], 16  }
  0xb5   :  { %2683 = vsyncadd [#allocation23], 4294967280 }
  0xb6   :  { %240 = sfence }
  0xb7   :  { %s3098_s19 = sld [smem:[#allocation44_spill]]  ;;  %v2703_v3 = vmov 0.0   ;;  %vm338_vm0 = vcmask 130048   ;;  %vm253_vm1 = vcmask 261120   ;;  %vm2704_vm2 = vmmov 0  }
  0xb8   :  { %s3099_s7 = sld [smem:[#allocation42_spill]]  ;;  %2148 = vmatprep.subr.mxu0 %v2703_v3  ;;  %2156 = vmatprep.mubr.msk.f32.mxu0 %vm2704_vm2, %v2703_v3  ;;  %v2045_v10 = vld [vmem:[#allocation6] ss:$0 sm:$0xff]  ;;  %v2053_v12 = vld [vmem:[#allocation11] ss:$0 sm:$0xff]  ;;  %v478_v38 = vlaneseq  ;;  %vm490_vm3 = vcmask 64512  }
  0xb9   :  { %s3100_s4 = sld [smem:[#allocation41_spill]]  ;;  %v2043_v14 = vld [vmem:[#allocation2] ss:$0 sm:$0xff]  ;;  %v2049_v16 = vld [vmem:[#allocation9] ss:$0 sm:$0xff] }
  0xba   :  { %s3101_s12 = sld [smem:[#allocation40_spill]]  ;;  %v2048_v20 = vld [vmem:[#allocation8] ss:$0 sm:$0xff]  ;;  %v2054_v26 = vld [vmem:[#allocation12] ss:$0 sm:$0xff]  ;;  %v479_v39 = vshrl.u32 %v478_v38, 7 }
  0xbb   :  { %s422_s24 = sld [smem:[#allocation14]]  ;;  %v2066_v56 = vld [vmem:[#allocation11 + $0x1] ss:$0 sm:$0xff] }
  0xbc   :  { %s2052_s13 = sld [smem:[#allocation14 + $0x1]]  ;;  %v2924_v42 = vsub.s32 0, %v479_v39 }
  0xbd   :  { %v330_v0 = vld [vmem:[%s3098_s19 + $0x8] sm:$0xff]  ;;  %v329_v2 = vld [vmem:[%s3098_s19] sm:$0xff]  ;;  %s2060_s2 = sld [smem:[#allocation14 + $0x80]] }
  0xbe   :  { %v245_v1 = vld [vmem:[%s3099_s7 + $0x18] sm:$0xff]  ;;  %2159 = vmatprep.subr.mxu1 %v330_v0  ;;  %v244_v4 = vld [vmem:[%s3099_s7 + $0x10] sm:$0xff]  ;;  %v243_v7 = vld [vmem:[%s3099_s7 + $0x8] sm:$0xff]  ;;  %s2065_s26 = sld [smem:[#allocation14 + $0x81]] }
  0xbf   :  { %2149 = vmatpush3.msra.mxu0 %v245_v1  ;;  %2160 = vmatpush3.msra.mxu1 %v330_v0  ;;  %v327_v5 = vld [vmem:[%s3100_s4] sm:$0xff]  ;;  %v328_v6 = vld [vmem:[%s3100_s4 + $0x8] sm:$0xff]  ;;  %s1487_s25 = sld [smem:[#allocation24]] }
  0xc0   :  { %2150 = vmatprep.subr.mxu0 %v2703_v3  ;;  %2161 = vmatprep.subr.mxu1 %v329_v2  ;;  %v242_v8 = vld [vmem:[%s3099_s7] sm:$0xff]  ;;  %s2080_s6 = sld [smem:[#allocation24 + $0x1]] }
  0xc1   :  { %2151 = vmatpush3.msra.mxu0 %v244_v4  ;;  %2162 = vmatpush3.msra.mxu1 %v329_v2  ;;  %v241_v9 = vld [vmem:[%s3101_s12] sm:$0xff]  ;;  %v443_v43 = vstv %s422_s24 }
  0xc2   :  { %2163 = vmatprep.mubr.msk.f32.mxu1 %vm338_vm0, %v327_v5  ;;  %2152 = vmatprep.subr.mxu0 %v2703_v3  ;;  %v617_v47 = vstv %s2052_s13  ;;  %v2061_v1 = vld [vmem:[#allocation8 + $0x1] ss:$0 sm:$0xff] }
  0xc3   :  { %2164 = vmatmul.mubr.msk.f32.vlgmr.msra.gmra.mxu1 %vm338_vm0, %v328_v6  ;;  %2153 = vmatpush3.msra.mxu0 %v243_v7 }
  0xc4   :  { %2154 = vmatprep.subr.mxu0 %v2703_v3 }
  0xc5   :  { %2155 = vmatpush3.msra.mxu0 %v242_v8 }
  0xc6   :  { %2157 = vmatmul.mubr.msk.f32.vlgmr.msra.gmra.mxu0 %vm253_vm1, %v241_v9  ;;  %2171 = vmatprep.subr.mxu0 %v2703_v3 }
  0xc7   :  { %2175 = vmatprep.mubr.msk.f32.mxu0 %vm2704_vm2, %v2703_v3 }
 0x183   :  { %v2165_v11 = vpop.f32.mrf.mxu1 }
 0x184   :  { %v2900_v13 = vadd.f32 %v2165_v11, %v2045_v10 }
 0x185   :  { %v411_v15 = vpop.f32.mrf.mxu1 }
 0x186   :  { %v323_v17 = vpop.f32.mrf.mxu0  ;;  %v2902_v18 = vadd.f32 %v2045_v10, %v411_v15  ;;  %v602_v19 = vmul.f32 %v2053_v12, %v2900_v13  ;;  %2172 = vmatpush3.msra.mxu0 %v2900_v13  ;;  %v436_v32 = vmul.f32 %v2049_v16, %v2900_v13 }
 0x187   :  { %v2906_v21 = vadd.f32 %v2043_v14, %v323_v17  ;;  %2173 = vmatprep.subr.mxu0 %v2703_v3 }
 0x188   :  { %v606_v22 = vsel %vm253_vm1, %v602_v19, 0.0  ;;  %v2158_v23 = vpop.f32.mrf.mxu0  ;;  %v435_v24 = vmul.f32 %v2049_v16, %v2902_v18  ;;  %2174 = vmatpush3.msra.mxu0 %v2902_v18  ;;  %v601_v27 = vmul.f32 %v2053_v12, %v2902_v18  ;;  %v440_v34 = vsel %vm253_vm1, %v436_v32, 0.0 }
 0x189   :  { %607 = vadd.xlane.f32.xlu1 %v606_v22  ;;  %2166 = vmatprep.subr.mxu1 %v2906_v21  ;;  %v427_v25 = vmul.f32 %v2048_v20, %v2906_v21  ;;  %v613_v30 = vmul.f32 %v2054_v26, %v2906_v21  ;;  %v1122_v62 = vmul.f32 %v2066_v56, %v2902_v18 }
 0x18a   :  { %2167 = vmatpush3.msra.mxu1 %v2906_v21  ;;  %v437_v28 = vsel %vm253_vm1, %v435_v24, 0.0  ;;  %v603_v31 = vsel %vm253_vm1, %v601_v27, 0.0  ;;  %v949_v6 = vmul.f32 %v2061_v1, %v2906_v21  ;;  %v1123_v24 = vmul.f32 %v2066_v56, %v2900_v13 }
 0x18b   :  { %v428_v29 = vsel %vm253_vm1, %v427_v25, 0.0  ;;  %2178 = vmatprep.subr.mxu1 %v2703_v3  ;;  %v614_v33 = vsel %vm253_vm1, %v613_v30, 0.0  ;;  %v1124_v4 = vsel %vm253_vm1, %v1122_v62, 0.0  ;;  %v2062_v25 = vld [vmem:[#allocation9 + $0x1] ss:$0 sm:$0xff] }
 0x18c   :  { %429 = vadd.xlane.f32.xlu0 %v428_v29  ;;  %v950_v7 = vsel %vm253_vm1, %v949_v6, 0.0  ;;  %v1127_v27 = vsel %vm253_vm1, %v1123_v24, 0.0  ;;  %v957_v29 = vmul.f32 %v2062_v25, %v2902_v18  ;;  %v958_v30 = vmul.f32 %v2062_v25, %v2900_v13 }
 0x18d   :  { %438 = vadd.xlane.f32.xlu1 %v437_v28  ;;  %v1138_v6 = vstv %s2065_s26 }
 0x18e   :  { %v959_v32 = vsel %vm253_vm1, %v957_v29, 0.0 }
 0x190   :  { %604 = vadd.xlane.f32.xlu0 %v603_v31  ;;  %v2067_v31 = vld [vmem:[#allocation12 + $0x1] ss:$0 sm:$0xff] }
 0x191   :  { %615 = vadd.xlane.f32.xlu1 %v614_v33  ;;  %v962_v33 = vsel %vm253_vm1, %v958_v30, 0.0 }
 0x194   :  { %441 = vadd.xlane.f32.xlu0 %v440_v34  ;;  %v1134_v34 = vmul.f32 %v2067_v31, %v2906_v21 }
 0x212   :  { %v608_v37 = vpop.xlane.xlu1 %607 }
 0x215   :  { %v430_v35 = vpop.xlane.xlu0 %429 }
 0x216   :  { %446 = vxpose.xlu0.b32.start.end [1/1] (short) (narrow) %v430_v35, 8  ;;  %v439_v40 = vpop.xlane.xlu1 %438  ;;  %v1135_v35 = vsel %vm253_vm1, %v1134_v34, 0.0 }
 0x217   :  { %v444_v46 = vadd.f32 %v443_v43, %v439_v40 }
 0x219   :  { %v605_v36 = vpop.xlane.xlu0 %604 }
 0x21a   :  { %619 = vxpose.xlu1.b32.start [1/2] (short) (narrow) %v605_v36, 8  ;;  %v616_v44 = vpop.xlane.xlu1 %615  ;;  %v746_v36 = vld [vmem:[#allocation15 + $0x18] sm:$0xff] }
 0x21b   :  { %v618_v52 = vadd.f32 %v617_v47, %v616_v44  ;;  %2189 = vmatprep.subr.mxu0 %v746_v36 }
 0x21d   :  { %v442_v41 = vpop.xlane.xlu0 %441 }
 0x21e   :  { %620 = vxpose.xlu1.b32.end [2/2] (short) (narrow) %v608_v37, 8  ;;  %v445_v48 = vadd.f32 %v443_v43, %v442_v41 }
 0x292   :  { %v462_v45 = vpop.trf.xlu0 }
 0x293   :  { %v481_v49 = vrot.slane %v462_v45, %v2924_v42 }
 0x295   :  { %v482_v50 = vadd.f32 %v481_v49, %v444_v46  ;;  %v483_v51 = vadd.f32 %v481_v49, %v445_v48  ;;  %v745_v49 = vld [vmem:[#allocation15 + $0x10] sm:$0xff] }
 0x296   :  { %v635_v53 = vpop.trf.xlu1 }
 0x297   :  { %v654_v54 = vrot.slane %v635_v53, %v2924_v42  ;;  %vm485_vm4 = vcmp.gt.f32.partialorder %v483_v51, 0.0  ;;  %v487_v55 = vmul.f32 0.01, %v483_v51  ;;  %vm484_vm5 = vcmp.gt.f32.partialorder %v482_v50, 0.0 }
 0x298   :  { %v486_v57 = vmul.f32 0.01, %v482_v50 }
 0x299   :  { %v655_v58 = vadd.f32 %v654_v54, %v618_v52  ;;  %v489_v59 = vsel %vm485_vm4, %v483_v51, %v487_v55  ;;  %v744_v51 = vld [vmem:[#allocation15 + $0x8] sm:$0xff]  ;;  %v743_v52 = vld [vmem:[#allocation15] sm:$0xff]  ;;  %v965_v54 = vstv %s2060_s2 }
 0x29a   :  { %v494_v60 = vsel %vm490_vm3, %v489_v59, -inf  ;;  %v488_v61 = vsel %vm484_vm5, %v482_v50, %v486_v57 }
 0x29b   :  { %495 = vmax.xlane.f32.xlu1 %v494_v60  ;;  %v491_v63 = vsel %vm490_vm3, %v488_v61, -inf  ;;  %vm656_vm6 = vcmp.gt.f32.partialorder %v655_v58, 0.0  ;;  %v657_v0 = vmul.f32 0.01, %v655_v58 }
 0x29c   :  { %492 = vmax.xlane.f32.xlu0 %v491_v63 }
 0x29d   :  { %v658_v2 = vsel %vm656_vm6, %v655_v58, %v657_v0 }
 0x29e   :  { %v659_v5 = vsel %vm338_vm0, %v658_v2, -inf }
 0x29f   :  { %1125 = vadd.xlane.f32.xlu1 %v1124_v4 }
 0x2a0   :  { %660 = vmax.xlane.f32.xlu0 %v659_v5 }
 0x2a4   :  { %951 = vadd.xlane.f32.xlu0 %v950_v7 }
 0x324   :  { %v496_v8 = vpop.xlane.xlu1 %495 }
 0x325   :  { %v498_v9 = vsub.f32 %v489_v59, %v496_v8  ;;  %v493_v10 = vpop.xlane.xlu0 %492 }
 0x326   :  { %v497_v11 = vsub.f32 %v488_v61, %v493_v10 }
 0x327   :  { %v501_v12 = vmul.f32 1.442695, %v498_v9 }
 0x328   :  { %v499_v14 = vmul.f32 1.442695, %v497_v11  ;;  %v1126_v37 = vpop.xlane.xlu1 %1125 }
 0x329   :  { %2288 = vpow2.f32 %v501_v12  ;;  %v661_v15 = vpop.xlane.xlu0 %660 }
 0x32a   :  { %2290 = vpow2.f32 %v499_v14  ;;  %v662_v16 = vsub.f32 %v658_v2, %v661_v15 }
 0x32c   :  { %v663_v17 = vmul.f32 1.442695, %v662_v16 }
 0x32d   :  { %v952_v38 = vpop.xlane.xlu0 %951 }
 0x32e   :  { %2292 = vpow2.f32 %v663_v17 }
 0x336   :  { %v2289_v19 = vpop.eup %2288 }
 0x337   :  { %v2291_v20 = vpop.eup %2290  ;;  %v506_v22 = vsel %vm490_vm3, %v2289_v19, 0.0 }
 0x338   :  { %507 = vadd.xlane.f32.xlu1 %v506_v22  ;;  %v503_v23 = vsel %vm490_vm3, %v2291_v20, 0.0 }
 0x339   :  { %504 = vadd.xlane.f32.xlu0 %v503_v23 }
 0x33b   :  { %v2293_v26 = vpop.eup %2292 }
 0x33c   :  { %v665_v28 = vsel %vm338_vm0, %v2293_v26, 0.0 }
 0x33d   :  { %1128 = vadd.xlane.f32.xlu0 %v1127_v27  ;;  %666 = vadd.xlane.f32.xlu1 %v665_v28 }
 0x341   :  { %960 = vadd.xlane.f32.xlu0 %v959_v32  ;;  %963 = vadd.xlane.f32.xlu1 %v962_v33 }
 0x345   :  { %1136 = vadd.xlane.f32.xlu0 %v1135_v35 }
 0x372   :  { %1140 = vxpose.xlu0.b32.start [1/2] (short) (narrow) %v1126_v37, 8 }
 0x374   :  { %968 = vxpose.xlu1.b32.start.end [1/1] (short) (narrow) %v952_v38, 8 }
 0x3c1   :  { %v508_v39 = vpop.xlane.xlu1 %507 }
 0x3c2   :  { %2294 = vrcp.f32 %v508_v39  ;;  %v505_v40 = vpop.xlane.xlu0 %504 }
 0x3c3   :  { %2296 = vrcp.f32 %v505_v40 }
 0x3c6   :  { %v667_v41 = vpop.xlane.xlu1 %666  ;;  %v1129_v43 = vpop.xlane.xlu0 %1128 }
 0x3c7   :  { %2298 = vrcp.f32 %v667_v41  ;;  %1141 = vxpose.xlu0.b32.end [2/2] (short) (narrow) %v1129_v43, 8 }
 0x3ca   :  { %v964_v53 = vpop.xlane.xlu1 %963  ;;  %v961_v55 = vpop.xlane.xlu0 %960 }
 0x3cb   :  { %v967_v57 = vadd.f32 %v965_v54, %v964_v53  ;;  %v966_v58 = vadd.f32 %v965_v54, %v961_v55  ;;  %v1267_v53 = vld [vmem:[#allocation15 + $0x30] sm:$0xff]  ;;  %v1266_v54 = vld [vmem:[#allocation15 + $0x28] sm:$0xff]  ;;  %v1265_v55 = vld [vmem:[#allocation15 + $0x20] sm:$0xff] }
 0x3ce   :  { %v1137_v5 = vpop.xlane.xlu0 %1136 }
 0x3cf   :  { %v2295_v44 = vpop.eup %2294  ;;  %v1139_v8 = vadd.f32 %v1138_v6, %v1137_v5 }
 0x3d0   :  { %v2297_v45 = vpop.eup %2296  ;;  %v512_v46 = vmul.f32 %v2295_v44, %v2289_v19 }
 0x3d1   :  { %v511_v47 = vmul.f32 %v2297_v45, %v2291_v20 }
 0x3d3   :  { %2168 = vmatprep.mubr.msk.f32.mxu1 %vm490_vm3, %v511_v47 }
 0x3d4   :  { %v2299_v48 = vpop.eup %2298  ;;  %2169 = vmatmul.mubr.msk.f32.vlgmr.msra.gmra.mxu1 %vm490_vm3, %v512_v46 }
 0x3d5   :  { %2179 = vmatpush3.msra.mxu1 %v746_v36  ;;  %v669_v50 = vmul.f32 %v2299_v48, %v2293_v26  ;;  %2186 = vmatprep.mubr.msk.f32.mxu1 %vm2704_vm2, %v2703_v3 }
 0x3d6   :  { %2180 = vmatprep.subr.mxu1 %v2703_v3 }
 0x3d7   :  { %2181 = vmatpush3.msra.mxu1 %v745_v49  ;;  %2176 = vmatmul.mubr.msk.f32.vlgmr.msra.gmra.mxu0 %vm338_vm0, %v669_v50 }
 0x3d8   :  { %2182 = vmatprep.subr.mxu1 %v2703_v3  ;;  %2190 = vmatpush3.msra.mxu0 %v746_v36 }
 0x3d9   :  { %2183 = vmatpush3.msra.mxu1 %v744_v51  ;;  %2191 = vmatprep.subr.mxu0 %v745_v49 }
 0x3da   :  { %2184 = vmatprep.subr.mxu1 %v2703_v3  ;;  %2192 = vmatpush3.msra.mxu0 %v745_v49 }
 0x3db   :  { %2185 = vmatpush3.msra.mxu1 %v743_v52  ;;  %2193 = vmatprep.subr.mxu0 %v744_v51 }
 0x3dc   :  { %2200 = vmatprep.subr.mxu1 %v2906_v21  ;;  %2194 = vmatpush3.msra.mxu0 %v744_v51 }
 0x3dd   :  { %2195 = vmatprep.subr.mxu0 %v743_v52 }
 0x3de   :  { %2196 = vmatpush3.msra.mxu0 %v743_v52  ;;  %v1268_v52 = vld [vmem:[#allocation15 + $0x38] sm:$0xff] }
 0x3df   :  { %2205 = vmatprep.subr.mxu0 %v2703_v3 }
 0x3f0   :  { %v984_v56 = vpop.trf.xlu1 }
 0x3f1   :  { %v1003_v59 = vrot.slane %v984_v56, %v2924_v42 }
 0x3f3   :  { %v1004_v60 = vadd.f32 %v1003_v59, %v966_v58  ;;  %v1005_v61 = vadd.f32 %v1003_v59, %v967_v57 }
 0x3f5   :  { %vm1007_vm7 = vcmp.gt.f32.partialorder %v1005_v61, 0.0  ;;  %v1009_v62 = vmul.f32 0.01, %v1005_v61  ;;  %vm1006_vm8 = vcmp.gt.f32.partialorder %v1004_v60, 0.0  ;;  %v1008_v63 = vmul.f32 0.01, %v1004_v60 }
 0x3f7   :  { %v1011_v0 = vsel %vm1007_vm7, %v1005_v61, %v1009_v62  ;;  %v1010_v1 = vsel %vm1006_vm8, %v1004_v60, %v1008_v63 }
 0x3f8   :  { %v1015_v2 = vsel %vm490_vm3, %v1011_v0, -inf  ;;  %v1012_v4 = vsel %vm490_vm3, %v1010_v1, -inf }
 0x3f9   :  { %1016 = vmax.xlane.f32.xlu0 %v1015_v2  ;;  %1013 = vmax.xlane.f32.xlu1 %v1012_v4 }
 0x43f   :  { %v1156_v7 = vpop.trf.xlu0 }
 0x440   :  { %v1175_v9 = vrot.slane %v1156_v7, %v2924_v42 }
 0x442   :  { %v1176_v10 = vadd.f32 %v1175_v9, %v1139_v8 }
 0x444   :  { %vm1177_vm9 = vcmp.gt.f32.partialorder %v1176_v10, 0.0  ;;  %v1178_v11 = vmul.f32 0.01, %v1176_v10 }
 0x446   :  { %v1179_v12 = vsel %vm1177_vm9, %v1176_v10, %v1178_v11 }
 0x447   :  { %v1180_v14 = vsel %vm338_vm0, %v1179_v12, -inf }
 0x448   :  { %1181 = vmax.xlane.f32.xlu1 %v1180_v14 }
 0x482   :  { %v1014_v15 = vpop.xlane.xlu1 %1013  ;;  %v1017_v16 = vpop.xlane.xlu0 %1016 }
 0x483   :  { %v1018_v17 = vsub.f32 %v1010_v1, %v1014_v15  ;;  %v1019_v19 = vsub.f32 %v1011_v0, %v1017_v16  ;;  %v2069_v16 = vld [vmem:[#allocation16 + $0x1] ss:$0 sm:$0xff] }
 0x485   :  { %v1020_v20 = vmul.f32 1.442695, %v1018_v17  ;;  %v1022_v22 = vmul.f32 1.442695, %v1019_v19 }
 0x487   :  { %2300 = vpow2.f32 %v1020_v20 }
 0x488   :  { %2302 = vpow2.f32 %v1022_v22 }
 0x494   :  { %v2301_v23 = vpop.eup %2300  ;;  %v2170_v24 = vpop.f32.mrf.mxu1 }
 0x495   :  { %v2303_v25 = vpop.eup %2302  ;;  %v1024_v26 = vsel %vm490_vm3, %v2301_v23, 0.0 }
 0x496   :  { %v585_v27 = vpop.f32.mrf.mxu1  ;;  %1025 = vadd.xlane.f32.xlu1 %v1024_v26  ;;  %v1027_v28 = vsel %vm490_vm3, %v2303_v25, 0.0 }
 0x497   :  { %1028 = vadd.xlane.f32.xlu0 %v1027_v28  ;;  %v739_v29 = vpop.f32.mrf.mxu0  ;;  %2197 = vmatprep.mubr.msk.f32.mxu0 %vm253_vm1, %v585_v27 }
 0x498   :  { %2187 = vmatmul.mubr.msk.f32.vlgmr.msra.gmra.mxu1 %vm253_vm1, %v739_v29  ;;  %2198 = vmatmul.mubr.msk.f32.vlgmr.msra.gmra.mxu0 %vm253_vm1, %v2170_v24 }
 0x499   :  { %2201 = vmatpush3.msra.mxu1 %v2906_v21  ;;  %2206 = vmatpush3.msra.mxu0 %v2900_v13  ;;  %v2177_v30 = vpop.f32.mrf.mxu0 }
 0x49a   :  { %2207 = vmatprep.subr.mxu0 %v2703_v3  ;;  %2209 = vmatprep.mubr.msk.f32.mxu0 %vm2704_vm2, %v2703_v3 }
 0x49b   :  { %2208 = vmatpush3.msra.mxu0 %v2902_v18  ;;  %2212 = vmatprep.subr.mxu1 %v2703_v3  ;;  %v2056_v18 = vld [vmem:[#allocation16] ss:$0 sm:$0xff] }
 0x49c   :  { %2223 = vmatprep.subr.mxu0 %v1268_v52 }
 0x4d1   :  { %v1182_v31 = vpop.xlane.xlu1 %1181 }
 0x4d2   :  { %v1183_v32 = vsub.f32 %v1179_v12, %v1182_v31 }
 0x4d4   :  { %v1184_v33 = vmul.f32 1.442695, %v1183_v32 }
 0x4d6   :  { %2304 = vpow2.f32 %v1184_v33 }
 0x4e3   :  { %v2305_v34 = vpop.eup %2304 }
 0x4e4   :  { %v1186_v35 = vsel %vm338_vm0, %v2305_v34, 0.0 }
 0x4e5   :  { %1187 = vadd.xlane.f32.xlu1 %v1186_v35 }
 0x51f   :  { %v1026_v21 = vpop.xlane.xlu1 %1025 }
 0x520   :  { %2306 = vrcp.f32 %v1026_v21  ;;  %v1029_v13 = vpop.xlane.xlu0 %1028 }
 0x521   :  { %2308 = vrcp.f32 %v1029_v13 }
 0x52d   :  { %v2307_v36 = vpop.eup %2306 }
 0x52e   :  { %v2309_v37 = vpop.eup %2308  ;;  %v1032_v38 = vmul.f32 %v2307_v36, %v2301_v23 }
 0x52f   :  { %v1033_v39 = vmul.f32 %v2309_v37, %v2303_v25 }
 0x530   :  { %2202 = vmatprep.mubr.msk.f32.mxu1 %vm490_vm3, %v1032_v38 }
 0x531   :  { %2203 = vmatmul.mubr.msk.f32.vlgmr.msra.gmra.mxu1 %vm490_vm3, %v1033_v39 }
 0x532   :  { %2220 = vmatprep.mubr.msk.f32.mxu1 %vm2704_vm2, %v2703_v3  ;;  %2213 = vmatpush3.msra.mxu1 %v1268_v52 }
 0x533   :  { %2214 = vmatprep.subr.mxu1 %v2703_v3 }
 0x534   :  { %2215 = vmatpush3.msra.mxu1 %v1267_v53 }
 0x535   :  { %2216 = vmatprep.subr.mxu1 %v2703_v3 }
 0x536   :  { %2217 = vmatpush3.msra.mxu1 %v1266_v54 }
 0x537   :  { %2218 = vmatprep.subr.mxu1 %v2703_v3 }
 0x538   :  { %2219 = vmatpush3.msra.mxu1 %v1265_v55 }
 0x558   :  { %v821_v40 = vpop.f32.mrf.mxu1  ;;  %v2199_v41 = vpop.f32.mrf.mxu0 }
 0x559   :  { %v822_v43 = vadd.f32 %v2056_v18, %v821_v40  ;;  %v915_v48 = vadd.f32 %v2199_v41, %v2056_v18 }
 0x55a   :  { %v2188_v44 = vpop.f32.mrf.mxu1  ;;  %v909_v45 = vpop.f32.mrf.mxu0 }
 0x55b   :  { %v910_v46 = vadd.f32 %v2056_v18, %v909_v45  ;;  %v825_v47 = vsel %vm253_vm1, %v822_v43, -inf  ;;  %v921_v50 = vsel %vm253_vm1, %v915_v48, -inf }
 0x55c   :  { %826 = vmax.xlane.f32.xlu0 %v825_v47 }
 0x55d   :  { %v918_v49 = vsel %vm253_vm1, %v910_v46, -inf }
 0x560   :  { %919 = vmax.xlane.f32.xlu0 %v918_v49 }
 0x564   :  { %922 = vmax.xlane.f32.xlu0 %v921_v50 }
 0x56e   :  { %v1188_v51 = vpop.xlane.xlu1 %1187 }
 0x56f   :  { %2310 = vrcp.f32 %v1188_v51 }
 0x57c   :  { %v2311_v56 = vpop.eup %2310 }
 0x57d   :  { %v1190_v57 = vmul.f32 %v2311_v56, %v2305_v34 }
 0x57f   :  { %2210 = vmatmul.mubr.msk.f32.vlgmr.msra.gmra.mxu0 %vm338_vm0, %v1190_v57 }
 0x580   :  { %2224 = vmatpush3.msra.mxu0 %v1268_v52 }
 0x581   :  { %2225 = vmatprep.subr.mxu0 %v1267_v53 }
 0x582   :  { %2226 = vmatpush3.msra.mxu0 %v1267_v53 }
 0x583   :  { %2227 = vmatprep.subr.mxu0 %v1266_v54 }
 0x584   :  { %2228 = vmatpush3.msra.mxu0 %v1266_v54 }
 0x585   :  { %2229 = vmatprep.subr.mxu0 %v1265_v55 }
 0x586   :  { %2230 = vmatpush3.msra.mxu0 %v1265_v55 }
 0x587   :  { %2239 = vmatprep.subr.mxu0 %v2703_v3 }
 0x5e5   :  { %v827_v58 = vpop.xlane.xlu0 %826 }
 0x5e6   :  { %v828_v59 = vsub.f32 %v822_v43, %v827_v58 }
 0x5e8   :  { %v829_v60 = vmul.f32 1.442695, %v828_v59 }
 0x5e9   :  { %v920_v61 = vpop.xlane.xlu0 %919 }
 0x5ea   :  { %2312 = vpow2.f32 %v829_v60  ;;  %v924_v62 = vsub.f32 %v910_v46, %v920_v61 }
 0x5ec   :  { %v926_v63 = vmul.f32 1.442695, %v924_v62 }
 0x5ed   :  { %v923_v0 = vpop.xlane.xlu0 %922 }
 0x5ee   :  { %2314 = vpow2.f32 %v926_v63  ;;  %v925_v1 = vsub.f32 %v915_v48, %v923_v0 }
 0x5f0   :  { %v928_v2 = vmul.f32 1.442695, %v925_v1 }
 0x5f1   :  { %v2204_v4 = vpop.f32.mrf.mxu1 }
 0x5f2   :  { %2316 = vpow2.f32 %v928_v2 }
 0x5f3   :  { %v1106_v5 = vpop.f32.mrf.mxu1 }
 0x5f4   :  { %2231 = vmatprep.mubr.msk.f32.mxu0 %vm253_vm1, %v1106_v5 }
 0x5f5   :  { %2232 = vmatmul.mubr.msk.f32.vlgmr.msra.gmra.mxu0 %vm253_vm1, %v2204_v4 }
 0x5f6   :  { %2243 = vmatprep.mubr.msk.f32.mxu0 %vm2704_vm2, %v2703_v3 }
 0x5f7   :  { %v2313_v6 = vpop.eup %2312 }
 0x5f8   :  { %v831_v7 = vsel %vm253_vm1, %v2313_v6, 0.0 }
 0x5f9   :  { %832 = vadd.xlane.f32.xlu0 %v831_v7 }
 0x5fb   :  { %v2991_v8 = vpop.eup %2314 }
 0x5fc   :  { %v930_v9 = vsel %vm253_vm1, %v2991_v8, 0.0 }
 0x5fd   :  { %931 = vadd.xlane.f32.xlu0 %v930_v9 }
 0x5ff   :  { %v2995_v10 = vpop.eup %2316 }
 0x600   :  { %v933_v11 = vsel %vm253_vm1, %v2995_v10, 0.0 }
 0x601   :  { %934 = vadd.xlane.f32.xlu0 %v933_v11  ;;  %v2076_v11 = vld [vmem:[#allocation18] ss:$0 sm:$0xff] }
 0x63f   :  { %v1260_v12 = vpop.f32.mrf.mxu0 }
 0x640   :  { %2221 = vmatmul.mubr.msk.f32.vlgmr.msra.gmra.mxu1 %vm253_vm1, %v1260_v12 }
 0x641   :  { %v2211_v14 = vpop.f32.mrf.mxu0 }
 0x682   :  { %v833_v40 = vpop.xlane.xlu0 %832 }
 0x686   :  { %v932_v41 = vpop.xlane.xlu0 %931 }
 0x68a   :  { %v935_v44 = vpop.xlane.xlu0 %934 }
 0x6b5   :  { %v2233_v15 = vpop.f32.mrf.mxu0 }
 0x6b6   :  { %v1437_v25 = vadd.f32 %v2233_v15, %v2069_v16 }
 0x6b7   :  { %v1431_v17 = vpop.f32.mrf.mxu0 }
 0x6b8   :  { %v1432_v23 = vadd.f32 %v2069_v16, %v1431_v17  ;;  %v1443_v27 = vsel %vm253_vm1, %v1437_v25, -inf }
 0x6ba   :  { %v1440_v26 = vsel %vm253_vm1, %v1432_v23, -inf }
 0x700   :  { %v1343_v19 = vpop.f32.mrf.mxu1 }
 0x701   :  { %v1344_v20 = vadd.f32 %v2069_v16, %v1343_v19  ;;  %v2081_v16 = vld [vmem:[#allocation21] ss:$0 sm:$0xff] }
 0x702   :  { %v2222_v22 = vpop.f32.mrf.mxu1 }
 0x703   :  { %v1347_v24 = vsel %vm253_vm1, %v1344_v20, -inf }
 0x704   :  { %1348 = vmax.xlane.f32.xlu1 %v1347_v24 }
 0x708   :  { %1441 = vmax.xlane.f32.xlu1 %v1440_v26 }
 0x70c   :  { %1444 = vmax.xlane.f32.xlu1 %v1443_v27 }
 0x78d   :  { %v1349_v28 = vpop.xlane.xlu1 %1348 }
 0x78e   :  { %v1350_v29 = vsub.f32 %v1344_v20, %v1349_v28  ;;  %v2082_v20 = vld [vmem:[#allocation22] ss:$0 sm:$0xff]  ;;  %v2077_v28 = vld [vmem:[#allocation19] ss:$0 sm:$0xff] }
 0x790   :  { %v1351_v30 = vmul.f32 1.442695, %v1350_v29 }
 0x791   :  { %v1442_v31 = vpop.xlane.xlu1 %1441 }
 0x792   :  { %2318 = vpow2.f32 %v1351_v30  ;;  %v1446_v32 = vsub.f32 %v1432_v23, %v1442_v31 }
 0x794   :  { %v1448_v33 = vmul.f32 1.442695, %v1446_v32 }
 0x795   :  { %v1445_v34 = vpop.xlane.xlu1 %1444 }
 0x796   :  { %2320 = vpow2.f32 %v1448_v33  ;;  %v1447_v35 = vsub.f32 %v1437_v25, %v1445_v34 }
 0x798   :  { %v1450_v21 = vmul.f32 1.442695, %v1447_v35 }
 0x79a   :  { %2322 = vpow2.f32 %v1450_v21 }
 0x79b   :  { %2324 = vrcp.f32 %v833_v40 }
 0x79f   :  { %v2319_v13 = vpop.eup %2318 }
 0x7a0   :  { %v1353_v36 = vsel %vm253_vm1, %v2319_v13, 0.0 }
 0x7a1   :  { %1354 = vadd.xlane.f32.xlu1 %v1353_v36 }
 0x7a3   :  { %v2321_v37 = vpop.eup %2320 }
 0x7a4   :  { %v1452_v38 = vsel %vm253_vm1, %v2321_v37, 0.0 }
 0x7a5   :  { %1453 = vadd.xlane.f32.xlu1 %v1452_v38 }
 0x7a7   :  { %v2323_v39 = vpop.eup %2322 }
 0x7a8   :  { %v1455_v18 = vsel %vm253_vm1, %v2323_v39, 0.0  ;;  %v2325_v47 = vpop.eup %2324 }
 0x7a9   :  { %1456 = vadd.xlane.f32.xlu1 %v1455_v18  ;;  %v835_v49 = vmul.f32 %v2325_v47, %v2313_v6 }
 0x82a   :  { %v1355_v43 = vpop.xlane.xlu1 %1354 }
 0x82b   :  { %2326 = vrcp.f32 %v1355_v43 }
 0x82c   :  { %2328 = vrcp.f32 %v932_v41  ;;  %v1689_v41 = vstv %s2080_s6 }
 0x82e   :  { %v1454_v45 = vpop.xlane.xlu1 %1453 }
 0x82f   :  { %2330 = vrcp.f32 %v1454_v45 }
 0x830   :  { %2332 = vrcp.f32 %v935_v44 }
 0x832   :  { %v1457_v46 = vpop.xlane.xlu1 %1456 }
 0x833   :  { %2334 = vrcp.f32 %v1457_v46 }
 0x838   :  { %v2327_v48 = vpop.eup %2326 }
 0x839   :  { %v1357_v50 = vmul.f32 %v2327_v48, %v2319_v13  ;;  %v2329_v51 = vpop.eup %2328 }
 0x83a   :  { %v938_v55 = vmul.f32 %v2329_v51, %v2991_v8 }
 0x83b   :  { %v1358_v52 = vadd.f32 %v1357_v50, %v835_v49 }
 0x83c   :  { %v2331_v53 = vpop.eup %2330 }
 0x83d   :  { %v1464_v54 = vmul.f32 0.5, %v1358_v52  ;;  %v1460_v56 = vmul.f32 %v2331_v53, %v2321_v37  ;;  %v2333_v57 = vpop.eup %2332 }
 0x83e   :  { %v939_v63 = vmul.f32 %v2333_v57, %v2995_v10 }
 0x83f   :  { %v1466_v58 = vmin.f32 %v1464_v54, 0.0  ;;  %v1462_v59 = vadd.f32 %v1460_v56, %v938_v55  ;;  %vm1465_vm10 = vcmp.gt.f32.partialorder %v1464_v54, 0.0 }
 0x840   :  { %v2335_v60 = vpop.eup %2334 }
 0x841   :  { %v1467_v61 = vmul.f32 1.442695, %v1466_v58  ;;  %v1471_v62 = vmul.f32 0.5, %v1462_v59  ;;  %v1461_v0 = vmul.f32 %v2335_v60, %v2323_v39  ;;  %v1512_v39 = vstv %s1487_s25 }
 0x843   :  { %2336 = vpow2.f32 %v1467_v61  ;;  %v1475_v1 = vmin.f32 %v1471_v62, 0.0  ;;  %v1463_v2 = vadd.f32 %v1461_v0, %v939_v63  ;;  %vm1473_vm11 = vcmp.gt.f32.partialorder %v1471_v62, 0.0 }
 0x845   :  { %v1477_v4 = vmul.f32 1.442695, %v1475_v1  ;;  %v1472_v5 = vmul.f32 0.5, %v1463_v2 }
 0x847   :  { %2338 = vpow2.f32 %v1477_v4  ;;  %v1476_v6 = vmin.f32 %v1472_v5, 0.0  ;;  %vm1474_vm12 = vcmp.gt.f32.partialorder %v1472_v5, 0.0 }
 0x849   :  { %v1479_v7 = vmul.f32 1.442695, %v1476_v6 }
 0x84b   :  { %2340 = vpow2.f32 %v1479_v7 }
 0x850   :  { %v2337_v8 = vpop.eup %2336 }
 0x851   :  { %v2073_v9 = vadd.f32 -1.0, %v2337_v8 }
 0x853   :  { %v1470_v12 = vsel %vm1465_vm10, %v1464_v54, %v2073_v9 }
 0x854   :  { %v2339_v14 = vpop.eup %2338  ;;  %2234 = vmatprep.subr.mxu1 %v1470_v12  ;;  %v1494_v15 = vmul.f32 %v2076_v11, %v1470_v12  ;;  %v1685_v26 = vmul.f32 %v2082_v20, %v1470_v12 }
 0x855   :  { %2235 = vmatpush3.msra.mxu1 %v1470_v12  ;;  %v2074_v10 = vadd.f32 -1.0, %v2339_v14  ;;  %v1818_v14 = vld [vmem:[%s3083_s18 + $0x18] sm:$0xff] }
 0x856   :  { %v1495_v17 = vsel %vm253_vm1, %v1494_v15, 0.0  ;;  %2246 = vmatprep.subr.mxu1 %v2703_v3  ;;  %v1686_v30 = vsel %vm253_vm1, %v1685_v26, 0.0  ;;  %v1816_v26 = vld [vmem:[%s3083_s18 + $0x8] sm:$0xff] }
 0x857   :  { %1496 = vadd.xlane.f32.xlu0 %v1495_v17  ;;  %v1483_v19 = vsel %vm1473_vm11, %v1471_v62, %v2074_v10 }
 0x858   :  { %v2341_v22 = vpop.eup %2340  ;;  %v1671_v23 = vmul.f32 %v2081_v16, %v1483_v19  ;;  %v1504_v32 = vmul.f32 %v2077_v28, %v1483_v19 }
 0x859   :  { %v2075_v24 = vadd.f32 -1.0, %v2341_v22 }
 0x85a   :  { %v1673_v25 = vsel %vm253_vm1, %v1671_v23, 0.0  ;;  %v1506_v34 = vsel %vm253_vm1, %v1504_v32, 0.0  ;;  %v2084_v32 = vld [vmem:[#allocation26] ss:$0 sm:$0xff] }
 0x85b   :  { %1674 = vadd.xlane.f32.xlu1 %v1673_v25  ;;  %v1484_v27 = vsel %vm1474_vm12, %v1472_v5, %v2075_v24  ;;  %v1817_v24 = vld [vmem:[%s3083_s18 + $0x10] sm:$0xff] }
 0x85c   :  { %2240 = vmatpush3.msra.mxu0 %v1484_v27  ;;  %v1672_v29 = vmul.f32 %v2081_v16, %v1484_v27  ;;  %v1505_v33 = vmul.f32 %v2077_v28, %v1484_v27  ;;  %v1815_v27 = vld [vmem:[%s3083_s18] sm:$0xff]  ;;  %s2705_s18 = smov [#allocation27]  }
 0x85d   :  { %2241 = vmatprep.subr.mxu0 %v2703_v3  ;;  %s2022_s27 = sshll.u32 %s2705_s18, 4  ;;  %s2023_s27 = int_to_ptr.vmem [resolvable:$true] %s2022_s27 }
 0x85e   :  { %2242 = vmatpush3.msra.mxu0 %v1483_v19  ;;  %v1676_v31 = vsel %vm253_vm1, %v1672_v29, 0.0  ;;  %v1509_v35 = vsel %vm253_vm1, %v1505_v33, 0.0  ;;  %s2642_s29 = scalar_lea.vmem %s2023_s27, 128  ;;  %p2647_p10 = scmp.lt.s32.totalorder %s2023_s27, %s2023_s27 }
 0x85f   :  { %1687 = vadd.xlane.f32.xlu1 %v1686_v30  ;;  %1677 = vadd.xlane.f32.xlu0 %v1676_v31  ;;  %p2643_p9 = scmp.ne.s32.totalorder %s2023_s27, %s2642_s29  ;;  %p2648_p11 = scmp.lt.s32.totalorder %s2642_s29, %s2642_s29 }
 0x860   :  { %2257 = vmatprep.subr.mxu0 %v1818_v14 }
 0x861   :  { %p2649_p12 = por %p2648_p11, %p2647_p10 }
 0x863   :  { %1507 = vadd.xlane.f32.xlu1 %v1506_v34  ;;  %1510 = vadd.xlane.f32.xlu0 %v1509_v35  ;;  %p2650_p13 = pnand %p2649_p12, %p2643_p9 }
 0x8e0   :  { %v1497_v21 = vpop.xlane.xlu0 %1496 }
 0x8e1   :  { %1515 = vxpose.xlu0.b32.start.end [1/1] (short) (narrow) %v1497_v21, 8 }
 0x8e4   :  { %v1675_v13 = vpop.xlane.xlu1 %1674 }
 0x8e5   :  { %1691 = vxpose.xlu1.b32.start [1/2] (short) (narrow) %v1675_v13, 8 }
 0x8e8   :  { %v1678_v36 = vpop.xlane.xlu0 %1677  ;;  %v1688_v37 = vpop.xlane.xlu1 %1687 }
 0x8e9   :  { %1692 = vxpose.xlu1.b32.end [2/2] (short) (narrow) %v1678_v36, 8  ;;  %v1690_v48 = vadd.f32 %v1689_v41, %v1688_v37 }
 0x8ec   :  { %v1511_v38 = vpop.xlane.xlu0 %1510  ;;  %v1508_v18 = vpop.xlane.xlu1 %1507 }
 0x8ed   :  { %v1513_v43 = vadd.f32 %v1512_v39, %v1508_v18  ;;  %v1514_v44 = vadd.f32 %v1512_v39, %v1511_v38 }
 0x95d   :  { %v1531_v40 = vpop.trf.xlu0 }
 0x95e   :  { %v1550_v45 = vrot.slane %v1531_v40, %v2924_v42 }
 0x960   :  { %v1551_v46 = vadd.f32 %v1550_v45, %v1513_v43  ;;  %v1552_v47 = vadd.f32 %v1550_v45, %v1514_v44 }
 0x961   :  { %v1707_v49 = vpop.trf.xlu1 }
 0x962   :  { %v1726_v50 = vrot.slane %v1707_v49, %v2924_v42  ;;  %vm1554_vm13 = vcmp.gt.f32.partialorder %v1552_v47, 0.0  ;;  %v1556_v51 = vmul.f32 0.01, %v1552_v47  ;;  %vm1553_vm14 = vcmp.gt.f32.partialorder %v1551_v46, 0.0 }
 0x963   :  { %v1555_v52 = vmul.f32 0.01, %v1551_v46 }
 0x964   :  { %v1727_v53 = vadd.f32 %v1726_v50, %v1690_v48  ;;  %v1558_v54 = vsel %vm1554_vm13, %v1552_v47, %v1556_v51 }
 0x965   :  { %v1562_v55 = vsel %vm490_vm3, %v1558_v54, -inf  ;;  %v1557_v56 = vsel %vm1553_vm14, %v1551_v46, %v1555_v52 }
 0x966   :  { %1563 = vmax.xlane.f32.xlu1 %v1562_v55  ;;  %v1559_v57 = vsel %vm490_vm3, %v1557_v56, -inf  ;;  %vm1728_vm15 = vcmp.gt.f32.partialorder %v1727_v53, 0.0  ;;  %v1729_v58 = vmul.f32 0.01, %v1727_v53 }
 0x967   :  { %1560 = vmax.xlane.f32.xlu0 %v1559_v57 }
 0x968   :  { %v1730_v59 = vsel %vm1728_vm15, %v1727_v53, %v1729_v58 }
 0x969   :  { %v1731_v60 = vsel %vm338_vm0, %v1730_v59, -inf }
 0x96b   :  { %1732 = vmax.xlane.f32.xlu0 %v1731_v60 }
 0x9ef   :  { %v1564_v42 = vpop.xlane.xlu1 %1563 }
 0x9f0   :  { %v1566_v61 = vsub.f32 %v1558_v54, %v1564_v42  ;;  %v1561_v62 = vpop.xlane.xlu0 %1560 }
 0x9f1   :  { %v1565_v63 = vsub.f32 %v1557_v56, %v1561_v62 }
 0x9f2   :  { %v1569_v0 = vmul.f32 1.442695, %v1566_v61 }
 0x9f3   :  { %v1567_v1 = vmul.f32 1.442695, %v1565_v63 }
 0x9f4   :  { %2342 = vpow2.f32 %v1569_v0  ;;  %v1733_v2 = vpop.xlane.xlu0 %1732 }
 0x9f5   :  { %2344 = vpow2.f32 %v1567_v1  ;;  %v1734_v4 = vsub.f32 %v1730_v59, %v1733_v2 }
 0x9f7   :  { %v1735_v5 = vmul.f32 1.442695, %v1734_v4 }
 0x9f9   :  { %2346 = vpow2.f32 %v1735_v5 }
 0xa01   :  { %v2343_v6 = vpop.eup %2342 }
 0xa02   :  { %v2345_v7 = vpop.eup %2344  ;;  %v1574_v8 = vsel %vm490_vm3, %v2343_v6, 0.0 }
 0xa03   :  { %1575 = vadd.xlane.f32.xlu1 %v1574_v8  ;;  %v1571_v9 = vsel %vm490_vm3, %v2345_v7, 0.0 }
 0xa04   :  { %1572 = vadd.xlane.f32.xlu0 %v1571_v9 }
 0xa06   :  { %v2347_v11 = vpop.eup %2346 }
 0xa07   :  { %v1737_v12 = vsel %vm338_vm0, %v2347_v11, 0.0 }
 0xa08   :  { %1738 = vadd.xlane.f32.xlu0 %v1737_v12 }
 0xa8c   :  { %v1576_v15 = vpop.xlane.xlu1 %1575 }
 0xa8d   :  { %2348 = vrcp.f32 %v1576_v15  ;;  %v1573_v10 = vpop.xlane.xlu0 %1572 }
 0xa8e   :  { %2350 = vrcp.f32 %v1573_v10 }
 0xa91   :  { %v1739_v16 = vpop.xlane.xlu0 %1738 }
 0xa92   :  { %2352 = vrcp.f32 %v1739_v16 }
 0xa9a   :  { %v2349_v17 = vpop.eup %2348 }
 0xa9b   :  { %v2351_v19 = vpop.eup %2350  ;;  %v1580_v20 = vmul.f32 %v2349_v17, %v2343_v6 }
 0xa9c   :  { %v1579_v22 = vmul.f32 %v2351_v19, %v2345_v7 }
 0xa9e   :  { %2236 = vmatprep.mubr.msk.f32.mxu1 %vm490_vm3, %v1579_v22 }
 0xa9f   :  { %v2353_v23 = vpop.eup %2352  ;;  %2237 = vmatmul.mubr.msk.f32.vlgmr.msra.gmra.mxu1 %vm490_vm3, %v1580_v20 }
 0xaa0   :  { %v1741_v25 = vmul.f32 %v2353_v23, %v2347_v11  ;;  %2247 = vmatpush3.msra.mxu1 %v1818_v14  ;;  %2254 = vmatprep.mubr.msk.f32.mxu1 %vm2704_vm2, %v2703_v3 }
 0xaa1   :  { %2248 = vmatprep.subr.mxu1 %v2703_v3 }
 0xaa2   :  { %2244 = vmatmul.mubr.msk.f32.vlgmr.msra.gmra.mxu0 %vm338_vm0, %v1741_v25  ;;  %2249 = vmatpush3.msra.mxu1 %v1817_v24 }
 0xaa3   :  { %2258 = vmatpush3.msra.mxu0 %v1818_v14  ;;  %2250 = vmatprep.subr.mxu1 %v2703_v3 }
 0xaa4   :  { %2259 = vmatprep.subr.mxu0 %v1817_v24  ;;  %2251 = vmatpush3.msra.mxu1 %v1816_v26 }
 0xaa5   :  { %2260 = vmatpush3.msra.mxu0 %v1817_v24  ;;  %2252 = vmatprep.subr.mxu1 %v2703_v3 }
 0xaa6   :  { %2261 = vmatprep.subr.mxu0 %v1816_v26  ;;  %2253 = vmatpush3.msra.mxu1 %v1815_v27 }
 0xaa7   :  { %2262 = vmatpush3.msra.mxu0 %v1816_v26 }
 0xaa8   :  { %2263 = vmatprep.subr.mxu0 %v1815_v27 }
 0xaa9   :  { %2264 = vmatpush3.msra.mxu0 %v1815_v27 }
 0xb5f   :  { %v2238_v28 = vpop.f32.mrf.mxu1 }
 0xb61   :  { %v1653_v29 = vpop.f32.mrf.mxu1 }
 0xb62   :  { %v1811_v30 = vpop.f32.mrf.mxu0  ;;  %2265 = vmatprep.mubr.msk.f32.mxu0 %vm253_vm1, %v1653_v29 }
 0xb63   :  { %2255 = vmatmul.mubr.msk.f32.vlgmr.msra.gmra.mxu1 %vm253_vm1, %v1811_v30  ;;  %2266 = vmatmul.mubr.msk.f32.vlgmr.msra.gmra.mxu0 %vm253_vm1, %v2238_v28 }
 0xb64   :  { %v2245_v31 = vpop.f32.mrf.mxu0 }
 0xc23   :  { %v1895_v33 = vpop.f32.mrf.mxu1  ;;  %v2267_v3 = vpop.f32.mrf.mxu0 }
 0xc24   :  { %v1896_v34 = vadd.f32 %v2084_v32, %v1895_v33  ;;  %v1989_v13 = vadd.f32 %v2267_v3, %v2084_v32 }
 0xc25   :  { %v2256_v35 = vpop.f32.mrf.mxu1  ;;  %v1983_v21 = vpop.f32.mrf.mxu0 }
 0xc26   :  { %v1984_v36 = vadd.f32 %v2084_v32, %v1983_v21  ;;  %v1899_v37 = vsel %vm490_vm3, %v1896_v34, -inf  ;;  %v1995_v39 = vsel %vm490_vm3, %v1989_v13, -inf }
 0xc27   :  { %1900 = vmax.xlane.f32.xlu1 %v1899_v37 }
 0xc28   :  { %v1992_v38 = vsel %vm490_vm3, %v1984_v36, -inf }
 0xc29   :  { %1993 = vmax.xlane.f32.xlu0 %v1992_v38 }
 0xc2b   :  { %1996 = vmax.xlane.f32.xlu1 %v1995_v39 }
 0xcb0   :  { %v1901_v18 = vpop.xlane.xlu1 %1900 }
 0xcb1   :  { %v1902_v40 = vsub.f32 %v1896_v34, %v1901_v18 }
 0xcb2   :  { %v1994_v41 = vpop.xlane.xlu0 %1993 }
 0xcb3   :  { %v1903_v43 = vmul.f32 1.442695, %v1902_v40  ;;  %v1998_v44 = vsub.f32 %v1984_v36, %v1994_v41 }
 0xcb4   :  { %v1997_v45 = vpop.xlane.xlu1 %1996 }
 0xcb5   :  { %2354 = vpow2.f32 %v1903_v43  ;;  %v2000_v46 = vmul.f32 1.442695, %v1998_v44  ;;  %v1999_v47 = vsub.f32 %v1989_v13, %v1997_v45 }
 0xcb7   :  { %2356 = vpow2.f32 %v2000_v46  ;;  %v2002_v48 = vmul.f32 1.442695, %v1999_v47 }
 0xcb9   :  { %2358 = vpow2.f32 %v2002_v48 }
 0xcc2   :  { %v2355_v49 = vpop.eup %2354 }
 0xcc3   :  { %v1905_v50 = vsel %vm490_vm3, %v2355_v49, 0.0 }
 0xcc4   :  { %v2357_v51 = vpop.eup %2356  ;;  %1906 = vadd.xlane.f32.xlu0 %v1905_v50 }
 0xcc5   :  { %v2004_v52 = vsel %vm490_vm3, %v2357_v51, 0.0 }
 0xcc6   :  { %v2359_v53 = vpop.eup %2358  ;;  %2005 = vadd.xlane.f32.xlu1 %v2004_v52 }
 0xcc7   :  { %v2007_v54 = vsel %vm490_vm3, %v2359_v53, 0.0 }
 0xcc8   :  { %2008 = vadd.xlane.f32.xlu0 %v2007_v54 }
 0xd4d   :  { %v1907_v55 = vpop.xlane.xlu0 %1906 }
 0xd4e   :  { %2360 = vrcp.f32 %v1907_v55 }
 0xd4f   :  { %v2006_v56 = vpop.xlane.xlu1 %2005 }
 0xd50   :  { %2362 = vrcp.f32 %v2006_v56 }
 0xd51   :  { %v2009_v57 = vpop.xlane.xlu0 %2008 }
 0xd52   :  { %2364 = vrcp.f32 %v2009_v57 }
 0xd5b   :  { %v2361_v58 = vpop.eup %2360 }
 0xd5c   :  { %v1909_v59 = vmul.f32 %v2361_v58, %v2355_v49 }
 0xd5d   :  { %v2363_v60 = vpop.eup %2362 }
 0xd5e   :  { %v2011_v42 = vmul.f32 %v2363_v60, %v2357_v51  ;;  %1910 = vst.msk [vmem:[#allocation27] sm:$0xff] %vm490_vm3, %v1909_v59 }
 0xd5f   :  { %v2365_v61 = vpop.eup %2364 }
 0xd60   :  { %2653 = shalt.err (!%p2650_p13)
}
 0xd61   :  { %2025 = dma.vmem_to_hbm [thread:$0]  %s2023_s27, 128, %s3085_s20, [#allocation4]   ;;  %2014 = vst.msk [vmem:[%s3086_s21] sm:$0xff] %vm490_vm3, %v2011_v42  ;;  %v2013_v62 = vmul.f32 %v2365_v61, %v2359_v53 }
 0xd63   :  { %2015 = vst.msk [vmem:[%s3086_s21 + $0x8] sm:$0xff] %vm490_vm3, %v2013_v62 }
 0xd64   :  { %2684 = dma.done.wait [#allocation4], 128  }
 0xd65   :  { %2685 = vsyncadd [#allocation4], 4294967168 }
 0xd66   :  { %2033 = vsyncpa [#allocation3], 1 }
 0xd67   :  { %2034 = vsyncpa [#allocation7], 1 }
 0xd68   :  { %2035 = vsyncpa [#allocation10], 1 }
 0xd69   :  { %2036 = vsyncpa [#allocation13], 1 }
 0xd6a   :  { %2037 = vsyncpa [#allocation17], 1 }
 0xd6b   :  { %2038 = vsyncpa [#allocation20], 1 }
 0xd6c   :  { %2039 = vsyncpa [#allocation23], 1 }
 0xd6d   :  { %2040 = vsyncpa [#allocation4], 1 }
 0xd6e   :  { %2041 = vsyncpa [#allocation5], 1 }
 0xd6f   :  { %2042 = vsyncpa [#allocation25], 1 }

</bundles_post_ra>
